<compile_context>
chip_gen: v7x
topology: tpu7x:2x2x1
jax: 0.10.0
libtpu: 0.0.40
codegen_flags: <defaults>
</compile_context>

<pallas_src>
import jax
import jax.numpy as jnp
from jax.experimental import pallas as pl
from jax.experimental.pallas import tpu as pltpu

K = 5                 # Chebyshev order (conv_kwargs K=5)
LAMBDA_MAX = 3.0      # fixed lambda_max
HIDDEN = 128          # bi1 output features (64 fwd + 64 bwd)
EMB = 512             # bi2 output features (256 fwd + 256 bwd)


# ---------------------------------------------------------------------------
# Pallas kernel: grid=(2,) over the (fwd, bwd) ChebConv direction.
# ---------------------------------------------------------------------------
def man_embedder_kernel(l_ref, x_ref, w1_ref, b1_ref, w2_ref, b2_ref,
                        pool_ref, out_ref):
    d = pl.program_id(0)                      # 0 = forward edges, 1 = reversed edges

    # ---------------- layer 1 (cheap thin mat-vecs; recomputed per program) --
    x = x_ref[...]                            # (N, F1) bf16

    def cheb_basis(L2):
        # L2 = 2 * L_hat (bf16).  T0 = x, T1 = L_hat x, Tk = (2 L_hat) T_{k-1} - T_{k-2}
        t0 = x.astype(jnp.float32)
        t1 = 0.5 * jnp.dot(L2, x, preferred_element_type=jnp.float32)
        terms = [t0, t1]
        for _ in range(2, K):
            t_next = jnp.dot(L2, terms[-1].astype(jnp.bfloat16),
                             preferred_element_type=jnp.float32) - terms[-2]
            terms.append(t_next)
        return terms

    basis = cheb_basis(l_ref[0]) + cheb_basis(l_ref[1])           # 2K x (N, F1) f32
    tmat1 = jnp.concatenate(basis, axis=1).astype(jnp.bfloat16)   # (N, 2*K*F1)
    # one (N, 2K*F1) @ (2K*F1, 128) dot against the block-diagonal fused weight
    h1 = jnp.dot(tmat1, w1_ref[...], preferred_element_type=jnp.float32)
    h1 = jnp.maximum(h1 + b1_ref[...], 0.0)                       # (N, 128) f32

    # ---------------- layer 2, this program's direction (dominant MXU work) --
    L2 = l_ref[d]                                                 # (N, N) bf16 = 2*L_hat
    h1_bf = h1.astype(jnp.bfloat16)
    t_prev = h1
    t_cur = 0.5 * jnp.dot(L2, h1_bf, preferred_element_type=jnp.float32)   # T1
    cols = [h1_bf]                                                # T0
    for _ in range(K - 2):
        t_cur_bf = t_cur.astype(jnp.bfloat16)
        cols.append(t_cur_bf)
        t_next = jnp.dot(L2, t_cur_bf, preferred_element_type=jnp.float32) - t_prev
        t_prev, t_cur = t_cur, t_next
    cols.append(t_cur.astype(jnp.bfloat16))                       # T_{K-1}
    tmat2 = jnp.concatenate(cols, axis=1)                         # (N, K*128) bf16
    # one (N, 640) @ (640, 256) dot instead of five 128-wide dots
    h2 = jnp.dot(tmat2, w2_ref[0], preferred_element_type=jnp.float32)
    h2 = jnp.maximum(h2 + b2_ref[0], 0.0).astype(jnp.bfloat16)    # (N, 256)

    # ---------------- global mean pool: write this direction's 256-wide half --
    out_ref[...] = jnp.dot(pool_ref[...], h2, preferred_element_type=jnp.float32)


# ---------------------------------------------------------------------------
# Plain-JAX glue: dense scaled Laplacian, pooling matrix, fused/packed params.
# ---------------------------------------------------------------------------
def scaled_laplacian(edge_index, num_nodes, lambda_max=LAMBDA_MAX):
    """Dense equivalent of PyG ChebConv.__norm__ (sym norm, fixed lambda_max)."""
    row, col = edge_index[0], edge_index[1]
    w = jnp.ones(row.shape, dtype=jnp.float32)
    A = jnp.zeros((num_nodes, num_nodes), jnp.float32).at[row, col].add(w)
    deg = A.sum(axis=1)                      # scatter on edge_index[0], as in get_laplacian
    deg_inv_sqrt = jnp.where(deg > 0, jax.lax.rsqrt(jnp.maximum(deg, 1e-30)), 0.0)
    A_norm = deg_inv_sqrt[:, None] * A * deg_inv_sqrt[None, :]
    eye = jnp.eye(num_nodes, dtype=jnp.float32)
    L = eye - A_norm
    return (2.0 / lambda_max) * L - eye


def mean_pool_matrix(batch, n_graphs, num_nodes):
    """(G_pad, N) mean-pool matrix; rows padded to a multiple of 8 (trim after)."""
    g_pad = pl.cdiv(n_graphs, 8) * 8
    onehot = (batch[None, :] == jnp.arange(g_pad)[:, None]).astype(jnp.float32)
    counts = jnp.maximum(onehot.sum(axis=1, keepdims=True), 1.0)
    return onehot / counts


def man_embedder(edge_index, x, batch, n_graphs, params):
    num_nodes, n_feat = x.shape
    kf = K * n_feat

    # 2 * scaled Laplacians (fwd / reversed edges), stacked over direction, bf16.
    L2f = 2.0 * scaled_laplacian(edge_index, num_nodes)
    L2b = 2.0 * scaled_laplacian(edge_index[::-1], num_nodes)
    l_stack = jnp.stack([L2f, L2b]).astype(jnp.bfloat16)               # (2, N, N)

    # Layer-1 block-diagonal fused weight (2*K*F1, 128) and concatenated bias.
    w1 = jnp.zeros((2 * kf, HIDDEN), jnp.float32)
    w1 = w1.at[:kf, :HIDDEN // 2].set(params["w1f"].reshape(kf, HIDDEN // 2))
    w1 = w1.at[kf:, HIDDEN // 2:].set(params["w1b"].reshape(kf, HIDDEN // 2))
    w1 = w1.astype(jnp.bfloat16)
    b1 = jnp.concatenate([params["b1f"], params["b1b"]], axis=1)        # (1,128) f32

    # Layer-2 fused weights (K*128, 256), stacked over direction.
    w2 = jnp.stack([params["w2f"].reshape(K * HIDDEN, EMB // 2),
                    params["w2b"].reshape(K * HIDDEN, EMB // 2)]).astype(jnp.bfloat16)
    b2 = jnp.stack([params["b2f"], params["b2b"]])                      # (2,1,256) f32

    pool = mean_pool_matrix(batch, n_graphs, num_nodes).astype(jnp.bfloat16)
    g_pad = pool.shape[0]
    x_bf = x.astype(jnp.bfloat16)

    grid_spec = pltpu.PrefetchScalarGridSpec(
        num_scalar_prefetch=0,
        grid=(2,),   # fwd / bwd direction; 'parallel' -> both TensorCores on v7x
        in_specs=[
            pl.BlockSpec((2, num_nodes, num_nodes), lambda d: (0, 0, 0)),  # 2*L_hat stack
            pl.BlockSpec((num_nodes, n_feat), lambda d: (0, 0)),           # x
            pl.BlockSpec((2 * kf, HIDDEN), lambda d: (0, 0)),              # W1 block-diag
            pl.BlockSpec((1, HIDDEN), lambda d: (0, 0)),                   # b1
            pl.BlockSpec((1, K * HIDDEN, EMB // 2), lambda d: (d, 0, 0)),  # W2 (per dir)
            pl.BlockSpec((1, 1, EMB // 2), lambda d: (d, 0, 0)),           # b2 (per dir)
            pl.BlockSpec((g_pad, num_nodes), lambda d: (0, 0)),            # pool
        ],
        out_specs=pl.BlockSpec((g_pad, EMB // 2), lambda d: (0, d)),       # column half
    )

    out = pl.pallas_call(
        man_embedder_kernel,
        out_shape=jax.ShapeDtypeStruct((g_pad, EMB), jnp.float32),
        grid_spec=grid_spec,
        compiler_params=pltpu.CompilerParams(
            dimension_semantics=("parallel",),
            vmem_limit_bytes=48 * 1024 * 1024),
    )(l_stack, x_bf, w1, b1, w2, b2, pool)
    return out[:n_graphs]


# ---------------------------------------------------------------------------
# Parameter init (glorot, as in PyG ChebConv) and references.
# ---------------------------------------------------------------------------
def glorot(key, shape):
    fan_in, fan_out = shape[-2], shape[-1]
    lim = (6.0 / (fan_in + fan_out)) ** 0.5
    return jax.random.uniform(key, shape, jnp.float32, -lim, lim)


def init_params(key, n_features):
    keys = jax.random.split(key, 8)
    return {
        "w1f": glorot(keys[0], (K, n_features, HIDDEN // 2)),
        "b1f": 0.01 * jax.random.normal(keys[1], (1, HIDDEN // 2), jnp.float32),
        "w1b": glorot(keys[2], (K, n_features, HIDDEN // 2)),
        "b1b": 0.01 * jax.random.normal(keys[3], (1, HIDDEN // 2), jnp.float32),
        "w2f": glorot(keys[4], (K, HIDDEN, EMB // 2)),
        "b2f": 0.01 * jax.random.normal(keys[5], (1, EMB // 2), jnp.float32),
        "w2b": glorot(keys[6], (K, HIDDEN, EMB // 2)),
        "b2b": 0.01 * jax.random.normal(keys[7], (1, EMB // 2), jnp.float32),
    }


def _cheb_mixed(L2, x, W, b):
    """ChebConv with bf16 matmul inputs / f32 accumulation, mirroring the kernel."""
    Wb = W.astype(jnp.bfloat16)
    xb = x.astype(jnp.bfloat16)
    out = jnp.dot(xb, Wb[0], preferred_element_type=jnp.float32)
    t_prev = x.astype(jnp.float32)
    t_cur = 0.5 * jnp.dot(L2, xb, preferred_element_type=jnp.float32)
    out = out + jnp.dot(t_cur.astype(jnp.bfloat16), Wb[1], preferred_element_type=jnp.float32)
    for k in range(2, K):
        t_next = jnp.dot(L2, t_cur.astype(jnp.bfloat16),
                         preferred_element_type=jnp.float32) - t_prev
        out = out + jnp.dot(t_next.astype(jnp.bfloat16), Wb[k],
                            preferred_element_type=jnp.float32)
        t_prev, t_cur = t_cur, t_next
    return out + b


def man_embedder_ref_bf16(edge_index, x, batch, n_graphs, p):
    """Plain-JAX mirror of the kernel math (same bf16 rounding points)."""
    N = x.shape[0]
    L2f = (2.0 * scaled_laplacian(edge_index, N)).astype(jnp.bfloat16)
    L2b = (2.0 * scaled_laplacian(edge_index[::-1], N)).astype(jnp.bfloat16)
    pool = mean_pool_matrix(batch, n_graphs, N)[:n_graphs].astype(jnp.bfloat16)
    x_bf = x.astype(jnp.bfloat16)
    h1 = jnp.maximum(jnp.concatenate(
        [_cheb_mixed(L2f, x_bf, p["w1f"], p["b1f"]),
         _cheb_mixed(L2b, x_bf, p["w1b"], p["b1b"])], axis=1), 0.0)
    h2f = jnp.maximum(_cheb_mixed(L2f, h1, p["w2f"], p["b2f"]), 0.0).astype(jnp.bfloat16)
    h2b = jnp.maximum(_cheb_mixed(L2b, h1, p["w2b"], p["b2b"]), 0.0).astype(jnp.bfloat16)
    return jnp.concatenate(
        [jnp.dot(pool, h2f, preferred_element_type=jnp.float32),
         jnp.dot(pool, h2b, preferred_element_type=jnp.float32)], axis=1)


def _cheb_f32(L, x, W, b):
    t_prev, out = x, x @ W[0]
    t_cur = L @ x
    out = out + t_cur @ W[1]
    for k in range(2, K):
        t_next = 2.0 * (L @ t_cur) - t_prev
        out = out + t_next @ W[k]
        t_prev, t_cur = t_cur, t_next
    return out + b


def man_embedder_ref_f32(edge_index, x, batch, n_graphs, p):
    """Full-f32 reference (original module semantics)."""
    N = x.shape[0]
    Lf = scaled_laplacian(edge_index, N)
    Lb = scaled_laplacian(edge_index[::-1], N)
    pool = mean_pool_matrix(batch, n_graphs, N)[:n_graphs]
    h1 = jnp.maximum(jnp.concatenate(
        [_cheb_f32(Lf, x, p["w1f"], p["b1f"]),
         _cheb_f32(Lb, x, p["w1b"], p["b1b"])], axis=1), 0.0)
    h2 = jnp.maximum(jnp.concatenate(
        [_cheb_f32(Lf, h1, p["w2f"], p["b2f"]),
         _cheb_f32(Lb, h1, p["w2b"], p["b2b"])], axis=1), 0.0)
    return pool @ h2


# ---------------------------------------------------------------------------
if __name__ == "__main__":
    key = jax.random.PRNGKey(0)
    k_x, k_p = jax.random.split(key)

    n_features = 1
    n_graphs = 2
    nodes_per_graph = 16
    num_nodes = n_graphs * nodes_per_graph          # 32

    # Synthetic forest: per graph, directed child -> parent edges of a binary tree.
    rows, cols = [], []
    for g in range(n_graphs):
        off = g * nodes_per_graph
        for i in range(1, nodes_per_graph):
            rows.append(off + i)
            cols.append(off + (i - 1) // 2)
    edge_index = jnp.array([rows, cols], dtype=jnp.int32)            # (2, 30)
    batch = jnp.repeat(jnp.arange(n_graphs, dtype=jnp.int32), nodes_per_graph)

    x = jax.random.normal(k_x, (num_nodes, n_features), jnp.float32)  # data.x
    params = init_params(k_p, n_features)

    # TODO(synk): 'sum' and 'att' (AttentionGlobalPool) pooling not implemented; 'avg' only.

    out = jax.block_until_ready(man_embedder(edge_index, x, batch, n_graphs, params))
    assert out.shape == (n_graphs, EMB), out.shape

    # Tight check against a plain-JAX mirror with identical bf16 rounding points.
    ref_bf = man_embedder_ref_bf16(edge_index, x, batch, n_graphs, params)
    assert jnp.allclose(out, ref_bf, rtol=5e-3, atol=5e-3), \
        float(jnp.max(jnp.abs(out - ref_bf)))

    # Loose check against the full-f32 module semantics (bf16 matmul-operand rounding only).
    ref32 = man_embedder_ref_f32(edge_index, x, batch, n_graphs, params)
    assert jnp.allclose(out, ref32, rtol=5e-2, atol=5e-2), \
        float(jnp.max(jnp.abs(out - ref32)))

    print("KERNEL_OK")
</pallas_src>

<mosaic_0001>
module attributes {stable_mosaic.version = 11 : i64} {
  func.func @man_embedder_kernel(%arg0: i32, %arg1: memref<2x32x32xbf16, #tpu.memory_space<vmem>>, %arg2: memref<32x1xbf16, #tpu.memory_space<vmem>>, %arg3: memref<10x128xbf16, #tpu.memory_space<vmem>>, %arg4: memref<1x128xf32, #tpu.memory_space<vmem>>, %arg5: memref<1x640x256xbf16, #tpu.memory_space<vmem>>, %arg6: memref<1x1x256xf32, #tpu.memory_space<vmem>>, %arg7: memref<8x32xbf16, #tpu.memory_space<vmem>>, %arg8: memref<8x256xf32, #tpu.memory_space<vmem>>) attributes {dimension_semantics = [#tpu.dimension_semantics<parallel>], iteration_bounds = array<i64: 2>, scalar_prefetch = 0 : i64, scratch_operands = 0 : i64, tpu.core_type = #tpu.core_type<tc>, window_params = [{pipeline_mode = #tpu.pipeline_mode<synchronous>, transform_indices = @transform_0, window_bounds = array<i64: 2, 32, 32>}, {pipeline_mode = #tpu.pipeline_mode<synchronous>, transform_indices = @transform_1, window_bounds = array<i64: 32, 1>}, {pipeline_mode = #tpu.pipeline_mode<synchronous>, transform_indices = @transform_2, window_bounds = array<i64: 10, 128>}, {pipeline_mode = #tpu.pipeline_mode<synchronous>, transform_indices = @transform_3, window_bounds = array<i64: 1, 128>}, {transform_indices = @transform_4, window_bounds = array<i64: 1, 640, 256>}, {transform_indices = @transform_5, window_bounds = array<i64: 1, 1, 256>}, {pipeline_mode = #tpu.pipeline_mode<synchronous>, transform_indices = @transform_6, window_bounds = array<i64: 8, 32>}, {transform_indices = @transform_7, window_bounds = array<i64: 8, 256>}]} {
    %c0 = arith.constant 0 : index
    %c0_0 = arith.constant 0 : index
    %0 = vector.load %arg2[%c0, %c0_0] : memref<32x1xbf16, #tpu.memory_space<vmem>>, vector<32x1xbf16>
    %c0_1 = arith.constant 0 : index
    %c0_2 = arith.constant 0 : index
    %c0_3 = arith.constant 0 : index
    %1 = vector.load %arg1[%c0_1, %c0_2, %c0_3] : memref<2x32x32xbf16, #tpu.memory_space<vmem>>, vector<1x32x32xbf16>
    %2 = vector.shape_cast %1 : vector<1x32x32xbf16> to vector<32x32xbf16>
    %3 = arith.extf %0 : vector<32x1xbf16> to vector<32x1xf32>
    %cst = arith.constant dense<0.000000e+00> : vector<32x1xf32>
    %4 = tpu.matmul %2, %0, %cst {dimension_numbers = #tpu.dot_dimension_numbers<[1], [0], [0], [1], [0, 0, 1, 1], [], []>} : vector<32x32xbf16>, vector<32x1xbf16>, vector<32x1xf32> -> vector<32x1xf32>
    %cst_4 = arith.constant 5.000000e-01 : f32
    %5 = vector.broadcast %cst_4 : f32 to vector<32x1xf32>
    %6 = arith.mulf %5, %4 : vector<32x1xf32>
    %7 = arith.truncf %6 : vector<32x1xf32> to vector<32x1xbf16>
    %cst_5 = arith.constant dense<0.000000e+00> : vector<32x1xf32>
    %8 = tpu.matmul %2, %7, %cst_5 {dimension_numbers = #tpu.dot_dimension_numbers<[1], [0], [0], [1], [0, 0, 1, 1], [], []>} : vector<32x32xbf16>, vector<32x1xbf16>, vector<32x1xf32> -> vector<32x1xf32>
    %9 = arith.subf %8, %3 : vector<32x1xf32>
    %10 = arith.truncf %9 : vector<32x1xf32> to vector<32x1xbf16>
    %cst_6 = arith.constant dense<0.000000e+00> : vector<32x1xf32>
    %11 = tpu.matmul %2, %10, %cst_6 {dimension_numbers = #tpu.dot_dimension_numbers<[1], [0], [0], [1], [0, 0, 1, 1], [], []>} : vector<32x32xbf16>, vector<32x1xbf16>, vector<32x1xf32> -> vector<32x1xf32>
    %12 = arith.subf %11, %6 : vector<32x1xf32>
    %13 = arith.truncf %12 : vector<32x1xf32> to vector<32x1xbf16>
    %cst_7 = arith.constant dense<0.000000e+00> : vector<32x1xf32>
    %14 = tpu.matmul %2, %13, %cst_7 {dimension_numbers = #tpu.dot_dimension_numbers<[1], [0], [0], [1], [0, 0, 1, 1], [], []>} : vector<32x32xbf16>, vector<32x1xbf16>, vector<32x1xf32> -> vector<32x1xf32>
    %15 = arith.subf %14, %9 : vector<32x1xf32>
    %c1 = arith.constant 1 : index
    %c0_8 = arith.constant 0 : index
    %c0_9 = arith.constant 0 : index
    %16 = vector.load %arg1[%c1, %c0_8, %c0_9] : memref<2x32x32xbf16, #tpu.memory_space<vmem>>, vector<1x32x32xbf16>
    %17 = vector.shape_cast %16 : vector<1x32x32xbf16> to vector<32x32xbf16>
    %18 = arith.extf %0 : vector<32x1xbf16> to vector<32x1xf32>
    %cst_10 = arith.constant dense<0.000000e+00> : vector<32x1xf32>
    %19 = tpu.matmul %17, %0, %cst_10 {dimension_numbers = #tpu.dot_dimension_numbers<[1], [0], [0], [1], [0, 0, 1, 1], [], []>} : vector<32x32xbf16>, vector<32x1xbf16>, vector<32x1xf32> -> vector<32x1xf32>
    %cst_11 = arith.constant 5.000000e-01 : f32
    %20 = vector.broadcast %cst_11 : f32 to vector<32x1xf32>
    %21 = arith.mulf %20, %19 : vector<32x1xf32>
    %22 = arith.truncf %21 : vector<32x1xf32> to vector<32x1xbf16>
    %cst_12 = arith.constant dense<0.000000e+00> : vector<32x1xf32>
    %23 = tpu.matmul %17, %22, %cst_12 {dimension_numbers = #tpu.dot_dimension_numbers<[1], [0], [0], [1], [0, 0, 1, 1], [], []>} : vector<32x32xbf16>, vector<32x1xbf16>, vector<32x1xf32> -> vector<32x1xf32>
    %24 = arith.subf %23, %18 : vector<32x1xf32>
    %25 = arith.truncf %24 : vector<32x1xf32> to vector<32x1xbf16>
    %cst_13 = arith.constant dense<0.000000e+00> : vector<32x1xf32>
    %26 = tpu.matmul %17, %25, %cst_13 {dimension_numbers = #tpu.dot_dimension_numbers<[1], [0], [0], [1], [0, 0, 1, 1], [], []>} : vector<32x32xbf16>, vector<32x1xbf16>, vector<32x1xf32> -> vector<32x1xf32>
    %27 = arith.subf %26, %21 : vector<32x1xf32>
    %28 = arith.truncf %27 : vector<32x1xf32> to vector<32x1xbf16>
    %cst_14 = arith.constant dense<0.000000e+00> : vector<32x1xf32>
    %29 = tpu.matmul %17, %28, %cst_14 {dimension_numbers = #tpu.dot_dimension_numbers<[1], [0], [0], [1], [0, 0, 1, 1], [], []>} : vector<32x32xbf16>, vector<32x1xbf16>, vector<32x1xf32> -> vector<32x1xf32>
    %30 = arith.subf %29, %24 : vector<32x1xf32>
    %31 = tpu.concatenate %3, %6, %9, %12, %15, %18, %21, %24, %27, %30 in 1 : vector<32x1xf32>, vector<32x1xf32>, vector<32x1xf32>, vector<32x1xf32>, vector<32x1xf32>, vector<32x1xf32>, vector<32x1xf32>, vector<32x1xf32>, vector<32x1xf32>, vector<32x1xf32> -> vector<32x10xf32>
    %32 = arith.truncf %31 : vector<32x10xf32> to vector<32x10xbf16>
    %c0_15 = arith.constant 0 : index
    %c0_16 = arith.constant 0 : index
    %33 = vector.load %arg3[%c0_15, %c0_16] : memref<10x128xbf16, #tpu.memory_space<vmem>>, vector<10x128xbf16>
    %cst_17 = arith.constant dense<0.000000e+00> : vector<32x128xf32>
    %34 = tpu.matmul %32, %33, %cst_17 {dimension_numbers = #tpu.dot_dimension_numbers<[1], [0], [0], [1], [0, 0, 1, 1], [], []>} : vector<32x10xbf16>, vector<10x128xbf16>, vector<32x128xf32> -> vector<32x128xf32>
    %c0_18 = arith.constant 0 : index
    %c0_19 = arith.constant 0 : index
    %35 = vector.load %arg4[%c0_18, %c0_19] : memref<1x128xf32, #tpu.memory_space<vmem>>, vector<1x128xf32>
    %36 = vector.broadcast %35 : vector<1x128xf32> to vector<32x128xf32>
    %37 = arith.addf %34, %36 : vector<32x128xf32>
    %cst_20 = arith.constant 0.000000e+00 : f32
    %38 = vector.broadcast %cst_20 : f32 to vector<32x128xf32>
    %39 = arith.maximumf %37, %38 : vector<32x128xf32>
    %40 = arith.index_cast %arg0 : i32 to index
    %c0_21 = arith.constant 0 : index
    %c0_22 = arith.constant 0 : index
    %41 = vector.load %arg1[%40, %c0_21, %c0_22] : memref<2x32x32xbf16, #tpu.memory_space<vmem>>, vector<1x32x32xbf16>
    %42 = vector.shape_cast %41 : vector<1x32x32xbf16> to vector<32x32xbf16>
    %43 = arith.truncf %39 : vector<32x128xf32> to vector<32x128xbf16>
    %cst_23 = arith.constant dense<0.000000e+00> : vector<32x128xf32>
    %44 = tpu.matmul %42, %43, %cst_23 {dimension_numbers = #tpu.dot_dimension_numbers<[1], [0], [0], [1], [0, 0, 1, 1], [], []>} : vector<32x32xbf16>, vector<32x128xbf16>, vector<32x128xf32> -> vector<32x128xf32>
    %cst_24 = arith.constant 5.000000e-01 : f32
    %45 = vector.broadcast %cst_24 : f32 to vector<32x128xf32>
    %46 = arith.mulf %45, %44 : vector<32x128xf32>
    %47 = arith.truncf %46 : vector<32x128xf32> to vector<32x128xbf16>
    %cst_25 = arith.constant dense<0.000000e+00> : vector<32x128xf32>
    %48 = tpu.matmul %42, %47, %cst_25 {dimension_numbers = #tpu.dot_dimension_numbers<[1], [0], [0], [1], [0, 0, 1, 1], [], []>} : vector<32x32xbf16>, vector<32x128xbf16>, vector<32x128xf32> -> vector<32x128xf32>
    %49 = arith.subf %48, %39 : vector<32x128xf32>
    %50 = arith.truncf %49 : vector<32x128xf32> to vector<32x128xbf16>
    %cst_26 = arith.constant dense<0.000000e+00> : vector<32x128xf32>
    %51 = tpu.matmul %42, %50, %cst_26 {dimension_numbers = #tpu.dot_dimension_numbers<[1], [0], [0], [1], [0, 0, 1, 1], [], []>} : vector<32x32xbf16>, vector<32x128xbf16>, vector<32x128xf32> -> vector<32x128xf32>
    %52 = arith.subf %51, %46 : vector<32x128xf32>
    %53 = arith.truncf %52 : vector<32x128xf32> to vector<32x128xbf16>
    %cst_27 = arith.constant dense<0.000000e+00> : vector<32x128xf32>
    %54 = tpu.matmul %42, %53, %cst_27 {dimension_numbers = #tpu.dot_dimension_numbers<[1], [0], [0], [1], [0, 0, 1, 1], [], []>} : vector<32x32xbf16>, vector<32x128xbf16>, vector<32x128xf32> -> vector<32x128xf32>
    %55 = arith.subf %54, %49 : vector<32x128xf32>
    %56 = arith.truncf %55 : vector<32x128xf32> to vector<32x128xbf16>
    %57 = tpu.concatenate %43, %47, %50, %53, %56 in 1 : vector<32x128xbf16>, vector<32x128xbf16>, vector<32x128xbf16>, vector<32x128xbf16>, vector<32x128xbf16> -> vector<32x640xbf16>
    %c0_28 = arith.constant 0 : index
    %c0_29 = arith.constant 0 : index
    %c0_30 = arith.constant 0 : index
    %58 = vector.load %arg5[%c0_28, %c0_29, %c0_30] : memref<1x640x256xbf16, #tpu.memory_space<vmem>>, vector<1x640x256xbf16>
    %59 = vector.shape_cast %58 : vector<1x640x256xbf16> to vector<640x256xbf16>
    %cst_31 = arith.constant dense<0.000000e+00> : vector<32x256xf32>
    %60 = tpu.matmul %57, %59, %cst_31 {dimension_numbers = #tpu.dot_dimension_numbers<[1], [0], [0], [1], [0, 0, 1, 1], [], []>} : vector<32x640xbf16>, vector<640x256xbf16>, vector<32x256xf32> -> vector<32x256xf32>
    %c0_32 = arith.constant 0 : index
    %c0_33 = arith.constant 0 : index
    %c0_34 = arith.constant 0 : index
    %61 = vector.load %arg6[%c0_32, %c0_33, %c0_34] : memref<1x1x256xf32, #tpu.memory_space<vmem>>, vector<1x1x256xf32>
    %62 = vector.shape_cast %61 : vector<1x1x256xf32> to vector<1x256xf32>
    %63 = vector.broadcast %62 : vector<1x256xf32> to vector<32x256xf32>
    %64 = arith.addf %60, %63 : vector<32x256xf32>
    %cst_35 = arith.constant 0.000000e+00 : f32
    %65 = vector.broadcast %cst_35 : f32 to vector<32x256xf32>
    %66 = arith.maximumf %64, %65 : vector<32x256xf32>
    %67 = arith.truncf %66 : vector<32x256xf32> to vector<32x256xbf16>
    %c0_36 = arith.constant 0 : index
    %c0_37 = arith.constant 0 : index
    %68 = vector.load %arg7[%c0_36, %c0_37] : memref<8x32xbf16, #tpu.memory_space<vmem>>, vector<8x32xbf16>
    %cst_38 = arith.constant dense<0.000000e+00> : vector<8x256xf32>
    %69 = tpu.matmul %68, %67, %cst_38 {dimension_numbers = #tpu.dot_dimension_numbers<[1], [0], [0], [1], [0, 0, 1, 1], [], []>} : vector<8x32xbf16>, vector<32x256xbf16>, vector<8x256xf32> -> vector<8x256xf32>
    %c0_39 = arith.constant 0 : index
    %c0_40 = arith.constant 0 : index
    %70 = vector.load %arg8[%c0_39, %c0_40] : memref<8x256xf32, #tpu.memory_space<vmem>>, vector<8x256xf32>
    tpu.vector_store %arg8[%c0_39, %c0_40], %69 {strides = array<i32>} : memref<8x256xf32, #tpu.memory_space<vmem>>, vector<8x256xf32>,
    return
  }
  func.func @transform_0(%arg0: i32) -> (i32, i32, i32) {
    %c0_i32 = arith.constant 0 : i32
    %c0_i32_0 = arith.constant 0 : i32
    %c0_i32_1 = arith.constant 0 : i32
    %c0_i32_2 = arith.constant 0 : i32
    return %c0_i32, %c0_i32_0, %c0_i32_1 : i32, i32, i32
  }
  func.func @transform_1(%arg0: i32) -> (i32, i32) {
    %c0_i32 = arith.constant 0 : i32
    %c0_i32_0 = arith.constant 0 : i32
    %c0_i32_1 = arith.constant 0 : i32
    return %c0_i32, %c0_i32_0 : i32, i32
  }
  func.func @transform_2(%arg0: i32) -> (i32, i32) {
    %c0_i32 = arith.constant 0 : i32
    %c0_i32_0 = arith.constant 0 : i32
    %c0_i32_1 = arith.constant 0 : i32
    return %c0_i32, %c0_i32_0 : i32, i32
  }
  func.func @transform_3(%arg0: i32) -> (i32, i32) {
    %c0_i32 = arith.constant 0 : i32
    %c0_i32_0 = arith.constant 0 : i32
    %c0_i32_1 = arith.constant 0 : i32
    return %c0_i32, %c0_i32_0 : i32, i32
  }
  func.func @transform_4(%arg0: i32) -> (i32, i32, i32) {
    %c0_i32 = arith.constant 0 : i32
    %c0_i32_0 = arith.constant 0 : i32
    %c0_i32_1 = arith.constant 0 : i32
    return %arg0, %c0_i32, %c0_i32_0 : i32, i32, i32
  }
  func.func @transform_5(%arg0: i32) -> (i32, i32, i32) {
    %c0_i32 = arith.constant 0 : i32
    %c0_i32_0 = arith.constant 0 : i32
    %c0_i32_1 = arith.constant 0 : i32
    return %arg0, %c0_i32, %c0_i32_0 : i32, i32, i32
  }
  func.func @transform_6(%arg0: i32) -> (i32, i32) {
    %c0_i32 = arith.constant 0 : i32
    %c0_i32_0 = arith.constant 0 : i32
    %c0_i32_1 = arith.constant 0 : i32
    return %c0_i32, %c0_i32_0 : i32, i32
  }
  func.func @transform_7(%arg0: i32) -> (i32, i32) {
    %c0_i32 = arith.constant 0 : i32
    %c0_i32_0 = arith.constant 0 : i32
    return %c0_i32, %arg0 : i32, i32
  }
}

</mosaic_0001>

<bundles_post_ra>
// kernel: tpu_custom_call.1
= control target key start
LH: loop header
LB: loop body
LE: loop exit
PB: predicated region body
PF: predicated region fallthrough
CT: control target
= control target key end

     0   :  { %s3475_s0 = inlined_call_operand.hbm [shape: bf16[2,32,32], index: 0, kind: input, shape index: {}]   ;;  %s3476_s1 = inlined_call_operand.vmem [shape: bf16[32,1], index: 1, kind: input, shape index: {}]   ;;  %s3477_s2 = inlined_call_operand.vmem [shape: bf16[10,128], index: 2, kind: input, shape index: {}]   ;;  %s3478_s3 = inlined_call_operand.vmem [shape: f32[1,128], index: 3, kind: input, shape index: {}]   ;;  %s3479_s4 = inlined_call_operand.hbm [shape: bf16[2,640,256], index: 4, kind: input, shape index: {}]   ;;  %s3480_s5 = inlined_call_operand.vmem [shape: f32[2,1,256], index: 5, kind: input, shape index: {}]   ;;  %s3481_s6 = inlined_call_operand.vmem [shape: bf16[8,32], index: 6, kind: input, shape index: {}]   ;;  %s3482_s7 = inlined_call_operand.hbm [shape: f32[8,512], index: 7, kind: output, shape index: {}]  }
   0x1   :  { %3486 = sst [smem:[#allocation11_spill]] %s3475_s0 }
   0x2   :  { %12 = vsyncpa [#allocation3], 0 }
   0x3   :  { %13 = vsyncpa [#allocation6], 0 }
   0x4   :  { %15 = vsyncpa [#allocation6 + $0x1], 0 }
   0x5   :  { %16 = vsyncpa [#allocation4], 0 }
   0x6   :  { %18 = vsyncpa [#allocation4 + $0x1], 0  ;;  %s2959_s24 = smov 0   ;;  %s2961_s25 = smov 0  }
   0x7   :  { %s2963_s26 = smov 0   ;;  %s2965_s27 = smov 0  }
   0x8 LB: > { %s2980_s28 = sadd.s32 4294967295, %s2900_s27   ;;  %s2164_s29 = sadd.s32 4294967294, %s2900_s27   ;;  %s2900_s27 = sphi %s2965_s27, %s3504_s27   ;;  %s2896_s26 = sphi %s2963_s26, %s3503_s26   ;;  %s2892_s25 = sphi %s2961_s25, %s3502_s25   ;;  %s2888_s24 = sphi %s2959_s24, %s3501_s24  }
   0x9   : > { %p128_p0 = scmp.ne.s32.totalorder %s2892_s25, %s2888_s24  ;;  %p3483_p1 = scmp.eq.s32.totalorder %s2980_s28, 0 }
   0xa   : > { %p205_p3 = scmp.eq.s32.totalorder %s2164_s29, 1  ;;  %p2165_p5 = scmp.ge.s32.totalorder %s2900_s27, 1 }
   0xb   : > { %p2989_p4 = por %p3483_p1, %p128_p0  ;;  %p212_p7 = scmp.lt.s32.totalorder %s2900_s27, 3 }
   0xc   : > { %p2994_p6 = por %p205_p3, %p128_p0  ;;  %s2902_s10 = smov [#allocation2]  }
   0xd   : > { %s3487_s30 = scalar_select %p2989_p4, 1, 0 }
   0xe   : > { %s3488_s8 = scalar_select %p2994_p6, 1, 0 }
   0xf   : > { %p2999_p8 = pnand %p2165_p5, %p212_p7  ;;  %s224_s11 = sshll.u32 %s2902_s10, 4  ;;  %s3003_s11 = int_to_ptr.vmem [resolvable:$true] %s224_s11 }
  0x10   : > { %s3015_s13 = sadd.s32 1, %s2900_s27   ;;  %s115_s14 = sadd.s32 1, %s2896_s26 }
  0x11   : > { %s3489_s9 = scalar_select %p2999_p8, 1, 0 }
  0x12   : > { %p2488_p9 = pneg %p2999_p8  ;;  %s112_s15 = ssub.s32 %s2900_s27, %s3015_s13 }
  0x13   : > { %s3491_s0 = sld [smem:[#allocation11_spill]] }
  0x14   : > { %p3010_p11 = pnand %p2488_p9, %p3483_p1 }
  0x16   : > { %p2774_p13 = pneg %p3010_p11 }
  0x19   : > { %s2772_s18 = scalar_lea.hbm %s3491_s0, 512 }
  0x1a   : > { %p2773_p12 = scmp.ne.s32.totalorder %s3491_s0, %s2772_s18  ;;  %p2779_p5 = scmp.lt.u32.totalorder %s2772_s18, %s3491_s0 }
  0x1c   : > { %p2775_p0 = pnand %p2774_p13, %p2773_p12 }
  0x1e   : > { %p2776_p3 = pneg %p2775_p0 }
  0x20   : > { %p2781_p7 = pnand %p2779_p5, %p2776_p3 }
  0x22   : > { %2784 = shalt.err (!%p2781_p7)
}
  0x23   : > { %s2785_s23 = scalar_lea.vmem %s3003_s11, 512  ;;  %p2793_p2 = scmp.lt.s32.totalorder %s3003_s11, %s3003_s11 }
  0x24   : > { %p2786_p9 = scmp.ne.s32.totalorder %s3003_s11, %s2785_s23  ;;  %p2794_p6 = scmp.lt.s32.totalorder %s2785_s23, %s2785_s23 }
  0x26   : > { %p2788_p10 = pnand %p2786_p9, %p2774_p13  ;;  %p2795_p4 = por %p2794_p6, %p2793_p2 }
  0x28   : > { %p2789_p1 = pneg %p2788_p10 }
  0x2a   : > { %p2796_p8 = pnand %p2795_p4, %p2789_p1 }
  0x2c   : > { %2799 = shalt.err (!%p2796_p8)
}
  0x2d   : > { %s2903_s29 = smov 64   ;;  %s2904_s10 = smov 4  }
  0x2e   : > { %2491 = dma.hbm_to_vmem [thread:$0]  (!%p3010_p11), %s3491_s0, 512, %s3003_s11, [#allocation3], %s2903_s29, %s2903_s29, %s2904_s10  }
  0x2f   : > { %p113_p2 = scmp.eq.s32.totalorder %s112_s15, 0  ;;  %p122_p1 = scmp.ne.s32.totalorder %s2896_s26, %s2892_s25 }
  0x30   : > { %p123_p4 = scmp.eq.s32.totalorder %s2900_s27, 0  ;;  %p2501_p6 = scmp.lt.s32.totalorder %s2900_s27, 2 }
  0x31   : > { %s3046_s18 = scalar_select %p113_p2, %s2896_s26, %s115_s14  }
  0x32   : > { %p124_p8 = por %p123_p4, %p122_p1  ;;  %p3492_p10 = scmp.eq.s32.totalorder %s2980_s28, 1 }
  0x33   : > { %s250_s20 = sand.u32 1, %s2896_s26   ;;  %s2478_s21 = smul.u32 10240, %s2900_s27 }
  0x34   : > { %p3050_p12 = por %p3492_p10, %p122_p1  ;;  %s2477_s22 = smul.u32 640, %s250_s20 }
  0x35   : > { %s3059_s16 = scalar_lea.hbm %s3479_s4, %s2478_s21  ;;  %p3061_p11 = pnand %p2501_p6, %p124_p8 }
  0x36   : > { %s254_s14 = scalar_lea.vmem [#allocation5], %s2477_s22  ;;  %s3067_s29 = scalar_lea.sflag [#allocation6], %s250_s20 }
  0x37   : > { %s261_s15 = sshll.u32 %s254_s14, 4  ;;  %s2800_s10 = scalar_lea.hbm %s3059_s16, 10240  ;;  %s3065_s15 = int_to_ptr.vmem [resolvable:$true] %s261_s15 }
  0x38   : > { %p2801_p13 = scmp.ne.s32.totalorder %s3059_s16, %s2800_s10  ;;  %p2802_p0 = pneg %p3061_p11 }
  0x39   : > { %s2805_s12 = scalar_lea.hbm %s3479_s4, 20480  ;;  %p2806_p7 = scmp.lt.u32.totalorder %s3059_s16, %s3479_s4 }
  0x3a   : > { %p2803_p3 = pnand %p2802_p0, %p2801_p13  ;;  %p2807_p9 = scmp.lt.u32.totalorder %s2805_s12, %s2800_s10 }
  0x3b   : > { %p2809_p1 = scmp.lt.u32.totalorder %s2800_s10, %s3059_s16 }
  0x3c   : > { %p2804_p5 = pneg %p2803_p3  ;;  %p2808_p2 = por %p2807_p9, %p2806_p7 }
  0x3e   : > { %p2810_p4 = por %p2809_p1, %p2808_p2 }
  0x40   : > { %p2811_p6 = pnand %p2810_p4, %p2804_p5 }
  0x42   : > { %2814 = shalt.err (!%p2811_p6)
}
  0x43   : > { %s2815_s20 = scalar_lea.vmem %s3065_s15, 10240  ;;  %s2905_s22 = smov [#allocation5]  }
  0x44   : > { %p2816_p8 = scmp.ne.s32.totalorder %s3065_s15, %s2815_s20  ;;  %s2820_s14 = sshll.u32 %s2905_s22, 4  ;;  %s2821_s14 = int_to_ptr.vmem [resolvable:$false] %s2820_s14 }
  0x45   : > { %s2822_s0 = scalar_lea.vmem %s2821_s14, 20480  ;;  %p2823_p3 = scmp.lt.s32.totalorder %s3065_s15, %s2821_s14 }
  0x46   : > { %p2818_p10 = pnand %p2816_p8, %p2802_p0  ;;  %p2824_p7 = scmp.lt.s32.totalorder %s2822_s0, %s2815_s20 }
  0x48   : > { %p2819_p13 = pneg %p2818_p10  ;;  %p2825_p9 = por %p2824_p7, %p2823_p3 }
  0x4a   : > { %p2826_p2 = pnand %p2825_p9, %p2819_p13 }
  0x4c   : > { %2829 = shalt.err (!%p2826_p2)
}
  0x4d   : > { %s2906_s10 = smov 128   ;;  %s2907_s17 = smov 8  }
  0x4e   : > { %2495 = dma.hbm_to_vmem [thread:$0]  (!%p3061_p11), %s3059_s16, 10240, %s3065_s15, %s3067_s29, %s2906_s10, %s2906_s10, %s2907_s17  }
  0x4f   : > { %p3495_p0 = scmp.ne.s32.totalorder %s3489_s9, 0 }
  0x50   : > { %p3496_p5 = scmp.eq.s32.totalorder (!%p3495_p0), %s2980_s28, 0 }
  0x51   : > { %280 = sbr.rel (%p3495_p0) target bundleno = 3177 (0xc69), region = 48 }
  0x58   : > { %2875 = dma.done.wait (%p3496_p5), [#allocation3], 512   ;;  %p3497_p1 = pmov %p3496_p5 }
  0x59   : > { %s3102_s21 = sand.u32 1, %s2892_s25   ;;  %p3498_p11 = scmp.ne.s32.totalorder %s3487_s30, 0 }
  0x5a   : > { %2877 = vsyncadd (%p3497_p1), [#allocation3], 4294966784  ;;  %s2479_s12 = smul.u32 640, %s3102_s21  ;;  %s287_s23 = scalar_lea.sflag [#allocation6], %s3102_s21 }
  0x5c   : > { %s3106_s20 = scalar_lea.vmem [#allocation5], %s2479_s12 }
  0x5d   : > { %2879 = dma.done.wait (%p3498_p11), %s287_s23, 10240  }
  0x5e   : > { %2881 = vsyncadd (%p3498_p11), %s287_s23, 4294957056  ;;  %v3115_v0 = vld [vmem:[%s3476_s1] sm:$0xff]   ;;  %v3120_v1 = vld [vmem:[%s3476_s1 + $0x8] sm:$0xff]   ;;  %vm365_vm0 = vcmask 261120   ;;  %s2908_s30 = smov 5   ;;  %s2909_s29 = smov 1  }
  0x5f   : > { %v2643_v2 = vld [vmem:[#allocation2] sm:$0xff]   ;;  %2350 = vmatprep.subr.bf16.mxu0 %v3115_v0  ;;  %v3127_v3 = vld [vmem:[#allocation2 + $0x8] sm:$0xff]   ;;  %v3134_v4 = vunpack.c.l.bf16 %v3115_v0  ;;  %v3137_v5 = vunpack.c.h.bf16 %v3115_v0  ;;  %v3145_v19 = vunpack.c.l.bf16 %v3120_v1  ;;  %v3148_v20 = vunpack.c.h.bf16 %v3120_v1  ;;  %s2910_s22 = smov 2   ;;  %v2645_v34 = vld [vmem:[#allocation2 + $0x10] sm:$0xff]   ;;  %s2911_s14 = smov 3  }
  0x60   : > { %2354 = vmatprep.mubr.msk.bf16.mxu0 %vm365_vm0, %v2643_v2  ;;  %2351 = vmatpush3.bf16.msra.mxu0 %v3115_v0  ;;  %v3178_v35 = vld [vmem:[#allocation2 + $0x18] sm:$0xff]   ;;  %s2912_s0 = smov 6   ;;  %s2913_s10 = smov 4   ;;  %vm1041_vm1 = vcmask 1044480   ;;  %vm973_vm2 = vcmask 7168   ;;  %vm978_vm3 = vcmask 15360  }
  0x61   : > { %2378 = vmatprep.mubr.msk.bf16.mxu1 %vm365_vm0, %v2643_v2  ;;  %2352 = vmatprep.subr.bf16.mxu0 %v3120_v1  ;;  %v2551_v6 = vpack.i.bf16 %v3137_v5, %v3134_v4  ;;  %v2556_v21 = vpack.i.bf16 %v3148_v20, %v3145_v19  ;;  %s2914_s17 = smov 7   ;;  %s2915_s12 = smov 8   ;;  %vm983_vm4 = vcmask 23552   ;;  %vm988_vm5 = vcmask 31744  }
  0x62   : > { %s2916_s16 = smov 9   ;;  %vm993_vm6 = vcmask 39936   ;;  %vm998_vm7 = vcmask 48128   ;;  %vm1003_vm8 = vcmask 56320   ;;  %vm1008_vm9 = vcmask 64512   ;;  %s2297_s11 = sshll.u32 %s2980_s28, 4 }
  0x63   : > { %2552 = vrot.lane.b32.xlu0 %v2551_v6, %s2908_s30  ;;  %2557 = vrot.lane.b32.xlu1 %v2556_v21, %s2908_s30  ;;  %vm1013_vm10 = vcmask 72704   ;;  %vm1034_vm11 = vcmask 80896   ;;  %s1100_s15 = scalar_lea.vmem [#allocation2], %s2297_s11  ;;  %p325_p4 = scmp.lt.s32.totalorder %s2980_s28, 1 }
  0x64   : > { %2353 = vmatpush3.bf16.msra.mxu0 %v3120_v1  ;;  %s2171_s23 = sshll.u32 %s3102_s21, 4  ;;  %s2298_s11 = sshll.u32 %s2980_s28, 8 }
  0x65   : > { %s324_s9 = scalar_lea.vmem [#allocation7], %s2171_s23 }
  0x67   : > { %2355 = vmatmul.mubr.msk.bf16.vlgmr.msra.gmra.mrb[0].mxu0 %vm365_vm0, %v3127_v3 }
  0x68   : > { %2362 = vmatprep.mubr.msk.bf16.mxu0 %vm365_vm0, %v2643_v2 }
 0x13a   : > { %v2356_v7 = vpop.f32.mrb[0].mxu0 }
 0x13b   : > { %v406_v8 = vpop.f32.mrb[1].mxu0  ;;  %v423_v10 = vmul.f32 0.5, %v2356_v7 }
 0x13c   : > { %v2357_v9 = vpop.f32.mrb[2].mxu0  ;;  %v421_v13 = vmul.f32 0.5, %v406_v8 }
 0x13d   : > { %v424_v11 = vmul.f32 0.5, %v2357_v9  ;;  %v409_v12 = vpop.f32.mrb[3].mxu0 }
 0x13e   : > { %v422_v14 = vmul.f32 0.5, %v409_v12 }
 0x13f   : > { %v2561_v15 = vpack.i.bf16 %v424_v11, %v423_v10  ;;  %v426_v17 = vpack.c.bf16 %v424_v11, %v423_v10 }
 0x140   : > { %v425_v16 = vpack.c.bf16 %v422_v14, %v421_v13  ;;  %v2566_v18 = vpack.i.bf16 %v422_v14, %v421_v13 }
 0x141   : > { %2562 = vrot.lane.b32.xlu0 %v2561_v15, %s2909_s29 }
 0x142   : > { %2358 = vmatprep.subr.bf16.mxu0 %v425_v16 }
 0x143   : > { %2359 = vmatpush3.bf16.msra.mxu0 %v425_v16 }
 0x144   : > { %2360 = vmatprep.subr.bf16.mxu0 %v426_v17 }
 0x145   : > { %2567 = vrot.lane.b32.xlu0 %v2566_v18, %s2909_s29  ;;  %s3433_s29 = scalar_lea.hbm %s3482_s7, %s2298_s11 }
 0x147   : > { %2361 = vmatpush3.bf16.msra.mxu0 %v426_v17 }
 0x14a   : > { %2363 = vmatmul.mubr.msk.bf16.vlgmr.msra.gmra.mrb[4].mxu0 %vm365_vm0, %v3127_v3 }
 0x14b   : > { %2370 = vmatprep.mubr.msk.bf16.mxu0 %vm365_vm0, %v2643_v2 }
 0x21d   : > { %v2364_v22 = vpop.f32.mrb[4].mxu0 }
 0x21e   : > { %v461_v23 = vpop.f32.mrb[5].mxu0  ;;  %v3153_v25 = vsub.f32 %v2364_v22, %v3145_v19 }
 0x21f   : > { %v2365_v24 = vpop.f32.mrb[6].mxu0  ;;  %v3159_v28 = vsub.f32 %v461_v23, %v3134_v4 }
 0x220   : > { %v3156_v26 = vsub.f32 %v2365_v24, %v3148_v20  ;;  %v464_v27 = vpop.f32.mrb[7].mxu0 }
 0x221   : > { %v3162_v29 = vsub.f32 %v464_v27, %v3137_v5 }
 0x222   : > { %v2571_v30 = vpack.i.bf16 %v3156_v26, %v3153_v25  ;;  %v481_v32 = vpack.c.bf16 %v3156_v26, %v3153_v25 }
 0x223   : > { %v480_v31 = vpack.c.bf16 %v3162_v29, %v3159_v28  ;;  %v2576_v33 = vpack.i.bf16 %v3162_v29, %v3159_v28 }
 0x224   : > { %2572 = vrot.lane.b32.xlu1 %v2571_v30, %s2910_s22 }
 0x225   : > { %2366 = vmatprep.subr.bf16.mxu0 %v480_v31 }
 0x226   : > { %2367 = vmatpush3.bf16.msra.mxu0 %v480_v31 }
 0x227   : > { %2368 = vmatprep.subr.bf16.mxu0 %v481_v32 }
 0x228   : > { %2577 = vrot.lane.b32.xlu1 %v2576_v33, %s2910_s22 }
 0x22a   : > { %2369 = vmatpush3.bf16.msra.mxu0 %v481_v32 }
 0x22b   : > { %2382 = vmatprep.subr.bf16.mxu0 %v3115_v0 }
 0x22d   : > { %2371 = vmatmul.mubr.msk.bf16.vlgmr.msra.gmra.mrb[8].mxu0 %vm365_vm0, %v3127_v3 }
 0x22e   : > { %2383 = vmatpush3.bf16.msra.mxu0 %v3115_v0  ;;  %2386 = vmatprep.mubr.msk.bf16.mxu0 %vm365_vm0, %v2645_v34 }
 0x22f   : > { %2384 = vmatprep.subr.bf16.mxu0 %v3120_v1 }
 0x232   : > { %2385 = vmatpush3.bf16.msra.mxu0 %v3120_v1 }
 0x235   : > { %2387 = vmatmul.mubr.msk.bf16.vlgmr.msra.gmra.mrb[12].mxu0 %vm365_vm0, %v3178_v35 }
 0x236   : > { %2402 = vmatprep.mubr.msk.bf16.mxu0 %vm365_vm0, %v2645_v34 }
 0x300   : > { %v2372_v36 = vpop.f32.mrb[8].mxu0 }
 0x301   : > { %v516_v37 = vpop.f32.mrb[9].mxu0  ;;  %v533_v39 = vsub.f32 %v2372_v36, %v423_v10 }
 0x302   : > { %v2373_v38 = vpop.f32.mrb[10].mxu0  ;;  %v531_v42 = vsub.f32 %v516_v37, %v421_v13 }
 0x303   : > { %v534_v40 = vsub.f32 %v2373_v38, %v424_v11  ;;  %v519_v41 = vpop.f32.mrb[11].mxu0 }
 0x304   : > { %v532_v43 = vsub.f32 %v519_v41, %v422_v14 }
 0x305   : > { %v2581_v44 = vpack.i.bf16 %v534_v40, %v533_v39  ;;  %v536_v45 = vpack.c.bf16 %v534_v40, %v533_v39 }
 0x306   : > { %v2586_v46 = vpack.i.bf16 %v532_v43, %v531_v42  ;;  %v535_v47 = vpack.c.bf16 %v532_v43, %v531_v42 }
 0x307   : > { %2582 = vrot.lane.b32.xlu1 %v2581_v44, %s2911_s14 }
 0x308   : > { %v2388_v48 = vpop.f32.mrb[12].mxu0  ;;  %2587 = vrot.lane.b32.xlu0 %v2586_v46, %s2911_s14  ;;  %2374 = vmatprep.subr.bf16.mxu1 %v535_v47 }
 0x309   : > { %2375 = vmatpush3.bf16.msra.mxu1 %v535_v47  ;;  %v645_v49 = vpop.f32.mrb[13].mxu0  ;;  %v662_v51 = vmul.f32 0.5, %v2388_v48  ;;  %v3207_v47 = vpop.permute.xlu0 %2552 }
 0x30a   : > { %2376 = vmatprep.subr.bf16.mxu1 %v536_v45  ;;  %v2389_v50 = vpop.f32.mrb[14].mxu0  ;;  %v660_v54 = vmul.f32 0.5, %v645_v49 }
 0x30b   : > { %v663_v52 = vmul.f32 0.5, %v2389_v50  ;;  %v648_v53 = vpop.f32.mrb[15].mxu0 }
 0x30c   : > { %v661_v55 = vmul.f32 0.5, %v648_v53 }
 0x30d   : > { %2377 = vmatpush3.bf16.msra.mxu1 %v536_v45  ;;  %v2591_v56 = vpack.i.bf16 %v663_v52, %v662_v51  ;;  %v665_v59 = vpack.c.bf16 %v663_v52, %v662_v51  ;;  %v2563_v49 = vpop.permute.xlu0 %2562 }
 0x30e   : > { %v2596_v57 = vpack.i.bf16 %v661_v55, %v660_v54  ;;  %v664_v58 = vpack.c.bf16 %v661_v55, %v660_v54 }
 0x30f   : > { %2592 = vrot.lane.b32.xlu1 %v2591_v56, %s2912_s0  ;;  %v2564_v56 = vunpack.i.l.bf16 %v2563_v49 }
 0x310   : > { %2597 = vrot.lane.b32.xlu0 %v2596_v57, %s2912_s0  ;;  %2379 = vmatmul.mubr.msk.bf16.vlgmr.msra.gmra.mrb[0].mxu1 %vm365_vm0, %v3127_v3 }
 0x311   : > { %2390 = vmatprep.subr.bf16.mxu1 %v664_v58  ;;  %2394 = vmatprep.mubr.msk.bf16.mxu1 %vm365_vm0, %v2645_v34 }
 0x312   : > { %2391 = vmatpush3.bf16.msra.mxu1 %v664_v58 }
 0x313   : > { %2392 = vmatprep.subr.bf16.mxu1 %v665_v59 }
 0x316   : > { %2393 = vmatpush3.bf16.msra.mxu1 %v665_v59 }
 0x319   : > { %2395 = vmatmul.mubr.msk.bf16.vlgmr.msra.gmra.mrb[4].mxu1 %vm365_vm0, %v3178_v35 }
 0x31a   : > { %2410 = vmatprep.mubr.msk.bf16.mxu1 %vm365_vm0, %v2645_v34  ;;  %v2647_v34 = vld [vmem:[%s3477_s2] sm:$0x1f]  }
 0x31b   : > { %v1043_v36 = vsel %vm1041_vm1, %v2647_v34, 0 }
 0x3e3   : > { %v2380_v60 = vpop.f32.mrb[0].mxu1 }
 0x3e4   : > { %v571_v61 = vpop.f32.mrb[1].mxu1  ;;  %v588_v63 = vsub.f32 %v2380_v60, %v3153_v25  ;;  %v2554_v60 = vunpack.i.l.bf16 %v3207_v47 }
 0x3e5   : > { %v2381_v62 = vpop.f32.mrb[2].mxu1  ;;  %v586_v2 = vsub.f32 %v571_v61, %v3159_v28 }
 0x3e6   : > { %v589_v0 = vsub.f32 %v2381_v62, %v3156_v26  ;;  %v574_v1 = vpop.f32.mrb[3].mxu1 }
 0x3e7   : > { %v587_v3 = vsub.f32 %v574_v1, %v3162_v29 }
 0x3e8   : > { %v2601_v6 = vpack.i.bf16 %v589_v0, %v588_v63  ;;  %v976_v63 = vsel %vm973_vm2, %v3145_v19, %v2564_v56 }
 0x3e9   : > { %v2606_v7 = vpack.i.bf16 %v587_v3, %v586_v2 }
 0x3ea   : > { %2602 = vrot.lane.b32.xlu1 %v2601_v6, %s2913_s10 }
 0x3eb   : > { %2607 = vrot.lane.b32.xlu0 %v2606_v7, %s2913_s10 }
 0x3ec   : > { %v2396_v8 = vpop.f32.mrb[4].mxu1 }
 0x3ed   : > { %v700_v9 = vpop.f32.mrb[5].mxu1  ;;  %v717_v11 = vsub.f32 %v2396_v8, %v3145_v19 }
 0x3ee   : > { %v2397_v10 = vpop.f32.mrb[6].mxu1  ;;  %v715_v14 = vsub.f32 %v700_v9, %v3134_v4 }
 0x3ef   : > { %v718_v12 = vsub.f32 %v2397_v10, %v3148_v20  ;;  %v703_v13 = vpop.f32.mrb[7].mxu1 }
 0x3f0   : > { %v716_v15 = vsub.f32 %v703_v13, %v3137_v5 }
 0x3f1   : > { %v2611_v16 = vpack.i.bf16 %v718_v12, %v717_v11  ;;  %v720_v21 = vpack.c.bf16 %v718_v12, %v717_v11 }
 0x3f2   : > { %v719_v17 = vpack.c.bf16 %v716_v15, %v715_v14  ;;  %v2616_v18 = vpack.i.bf16 %v716_v15, %v715_v14 }
 0x3f3   : > { %2612 = vrot.lane.b32.xlu1 %v2611_v16, %s2914_s17 }
 0x3f4   : > { %2398 = vmatprep.subr.bf16.mxu0 %v719_v17  ;;  %2617 = vrot.lane.b32.xlu0 %v2616_v18, %s2914_s17 }
 0x3f5   : > { %2399 = vmatpush3.bf16.msra.mxu0 %v719_v17 }
 0x3f6   : > { %2400 = vmatprep.subr.bf16.mxu0 %v720_v21 }
 0x3f9   : > { %2401 = vmatpush3.bf16.msra.mxu0 %v720_v21 }
 0x3fa   : > { %2476 = vmatprep.subr.msk.bf16.mxu0 %vm1041_vm1, %v2647_v34 }
 0x3fc   : > { %2403 = vmatmul.mubr.msk.bf16.vlgmr.msra.gmra.mrb[16].mxu0 %vm365_vm0, %v3178_v35 }
 0x3fd   : > { %2415 = vmatpush3.bf16.msra.mxu0 %v1043_v36 }
 0x4cf   : > { %v2404_v22 = vpop.f32.mrb[16].mxu0 }
 0x4d0   : > { %v755_v23 = vpop.f32.mrb[17].mxu0  ;;  %v772_v25 = vsub.f32 %v2404_v22, %v662_v51  ;;  %v2568_v51 = vpop.permute.xlu0 %2567 }
 0x4d1   : > { %v2405_v24 = vpop.f32.mrb[18].mxu0  ;;  %v770_v28 = vsub.f32 %v755_v23, %v660_v54  ;;  %v2565_v54 = vunpack.i.h.bf16 %v2563_v49  ;;  %v2570_v57 = vunpack.i.h.bf16 %v2568_v51  ;;  %v2569_v58 = vunpack.i.l.bf16 %v2568_v51 }
 0x4d2   : > { %v773_v26 = vsub.f32 %v2405_v24, %v663_v52  ;;  %v758_v27 = vpop.f32.mrb[19].mxu0 }
 0x4d3   : > { %v771_v29 = vsub.f32 %v758_v27, %v661_v55  ;;  %v977_v61 = vsel %vm973_vm2, %v3148_v20, %v2565_v54  ;;  %v975_v0 = vsel %vm973_vm2, %v3137_v5, %v2570_v57  ;;  %v974_v1 = vsel %vm973_vm2, %v3134_v4, %v2569_v58 }
 0x4d4   : > { %v2621_v30 = vpack.i.bf16 %v773_v26, %v772_v25  ;;  %v775_v31 = vpack.c.bf16 %v773_v26, %v772_v25  ;;  %v2588_v53 = vpop.permute.xlu0 %2587  ;;  %v2555_v27 = vunpack.i.h.bf16 %v3207_v47 }
 0x4d5   : > { %v2626_v32 = vpack.i.bf16 %v771_v29, %v770_v28  ;;  %v774_v33 = vpack.c.bf16 %v771_v29, %v770_v28  ;;  %v2590_v13 = vunpack.i.h.bf16 %v2588_v53 }
 0x4d6   : > { %2622 = vrot.lane.b32.xlu1 %v2621_v30, %s2915_s12 }
 0x4d7   : > { %2406 = vmatprep.subr.bf16.mxu1 %v774_v33  ;;  %2627 = vrot.lane.b32.xlu0 %v2626_v32, %s2915_s12 }
 0x4d8   : > { %2407 = vmatpush3.bf16.msra.mxu1 %v774_v33  ;;  %v3211_v59 = vpop.permute.xlu0 %2597 }
 0x4d9   : > { %2408 = vmatprep.subr.bf16.mxu1 %v775_v31  ;;  %v2600_v34 = vunpack.i.h.bf16 %v3211_v59  ;;  %v2599_v36 = vunpack.i.l.bf16 %v3211_v59 }
 0x4dc   : > { %2409 = vmatpush3.bf16.msra.mxu1 %v775_v31  ;;  %v2608_v3 = vpop.permute.xlu0 %2607 }
 0x4df   : > { %2411 = vmatmul.mubr.msk.bf16.vlgmr.msra.gmra.mrb[8].mxu1 %vm365_vm0, %v3178_v35  ;;  %v3205_v35 = vpop.permute.xlu1 %2557 }
 0x4e0   : > { %v2560_v19 = vunpack.i.h.bf16 %v3205_v35  ;;  %v2559_v5 = vunpack.i.l.bf16 %v3205_v35  ;;  %v2618_v26 = vpop.permute.xlu0 %2617 }
 0x4e3   : > { %v2573_v48 = vpop.permute.xlu1 %2572 }
 0x4e4   : > { %v2574_v2 = vunpack.i.l.bf16 %v2573_v48  ;;  %v2575_v6 = vunpack.i.h.bf16 %v2573_v48 }
 0x4e6   : > { %v981_v4 = vsel %vm978_vm3, %v976_v63, %v2574_v2  ;;  %v982_v16 = vsel %vm978_vm3, %v977_v61, %v2575_v6 }
 0x4e7   : > { %v2578_v50 = vpop.permute.xlu1 %2577 }
 0x4e8   : > { %v2580_v7 = vunpack.i.h.bf16 %v2578_v50  ;;  %v2579_v8 = vunpack.i.l.bf16 %v2578_v50 }
 0x4ea   : > { %v980_v17 = vsel %vm978_vm3, %v975_v0, %v2580_v7  ;;  %v979_v18 = vsel %vm978_vm3, %v974_v1, %v2579_v8 }
 0x4eb   : > { %v2583_v52 = vpop.permute.xlu1 %2582  ;;  %v985_v28 = vsel %vm983_vm4, %v980_v17, %v2590_v13  ;;  %v2195_v13 = vld [vmem:[%s3478_s3] ss:$0 sm:$0xff] }
 0x4ec   : > { %v2584_v9 = vunpack.i.l.bf16 %v2583_v52  ;;  %v2585_v10 = vunpack.i.h.bf16 %v2583_v52 }
 0x4ee   : > { %v986_v21 = vsel %vm983_vm4, %v981_v4, %v2584_v9  ;;  %v987_v23 = vsel %vm983_vm4, %v982_v16, %v2585_v10 }
 0x4ef   : > { %v3209_v55 = vpop.permute.xlu1 %2592 }
 0x4f0   : > { %v2595_v31 = vunpack.i.h.bf16 %v3209_v55  ;;  %v2594_v32 = vunpack.i.l.bf16 %v3209_v55 }
 0x4f3   : > { %v2603_v62 = vpop.permute.xlu1 %2602 }
 0x4f4   : > { %v2605_v20 = vunpack.i.h.bf16 %v2603_v62 }
 0x4f6   : > { %v992_v29 = vsel %vm988_vm5, %v987_v23, %v2605_v20 }
 0x4f7   : > { %v2613_v22 = vpop.permute.xlu1 %2612 }
 0x5b2   : > { %v2412_v37 = vpop.f32.mrb[8].mxu1 }
 0x5b3   : > { %v810_v38 = vpop.f32.mrb[9].mxu1  ;;  %v827_v40 = vsub.f32 %v2412_v37, %v717_v11  ;;  %v2589_v11 = vunpack.i.l.bf16 %v2588_v53 }
 0x5b4   : > { %v2413_v39 = vpop.f32.mrb[10].mxu1  ;;  %v825_v43 = vsub.f32 %v810_v38, %v715_v14  ;;  %v2609_v14 = vunpack.i.l.bf16 %v2608_v3  ;;  %v2623_v38 = vpop.permute.xlu1 %2622 }
 0x5b5   : > { %v828_v41 = vsub.f32 %v2413_v39, %v718_v12  ;;  %v813_v42 = vpop.f32.mrb[11].mxu1  ;;  %v2604_v12 = vunpack.i.l.bf16 %v2603_v62  ;;  %v984_v24 = vsel %vm983_vm4, %v979_v18, %v2589_v11  ;;  %v997_v39 = vsel %vm993_vm6, %v992_v29, %v2560_v19 }
 0x5b6   : > { %v826_v44 = vsub.f32 %v813_v42, %v716_v15  ;;  %v2610_v15 = vunpack.i.h.bf16 %v2608_v3  ;;  %v989_v30 = vsel %vm988_vm5, %v984_v24, %v2609_v14  ;;  %v2614_v42 = vunpack.i.l.bf16 %v2613_v22 }
 0x5b7   : > { %v2636_v45 = vpack.i.bf16 %v828_v41, %v827_v40  ;;  %v991_v25 = vsel %vm988_vm5, %v986_v21, %v2604_v12  ;;  %v994_v40 = vsel %vm993_vm6, %v989_v30, %v2554_v60  ;;  %v2615_v41 = vunpack.i.h.bf16 %v2613_v22  ;;  %v2648_v12 = vld [vmem:[%s1100_s15] sm:$0xff]  }
 0x5b8   : > { %v2631_v46 = vpack.i.bf16 %v826_v44, %v825_v43  ;;  %v990_v33 = vsel %vm988_vm5, %v985_v28, %v2610_v15  ;;  %v996_v37 = vsel %vm993_vm6, %v991_v25, %v2559_v5  ;;  %v2628_v43 = vpop.permute.xlu0 %2627  ;;  %v2625_v47 = vunpack.i.h.bf16 %v2623_v38  ;;  %2424 = vmatprep.mubr.msk.bf16.mxu1 %vm365_vm0, %v2648_v12 }
 0x5b9   : > { %2637 = vrot.lane.b32.xlu1 %v2636_v45, %s2916_s16  ;;  %v995_v44 = vsel %vm993_vm6, %v990_v33, %v2555_v27  ;;  %v2620_v45 = vunpack.i.h.bf16 %v2618_v26  ;;  %v1001_v35 = vsel %vm998_vm7, %v996_v37, %v2594_v32  ;;  %v2624_v48 = vunpack.i.l.bf16 %v2623_v38 }
 0x5ba   : > { %2632 = vrot.lane.b32.xlu0 %v2631_v46, %s2916_s16  ;;  %v2619_v46 = vunpack.i.l.bf16 %v2618_v26  ;;  %v1002_v49 = vsel %vm998_vm7, %v997_v39, %v2595_v31  ;;  %v999_v50 = vsel %vm998_vm7, %v994_v40, %v2599_v36  ;;  %v2630_v51 = vunpack.i.h.bf16 %v2628_v43  ;;  %v3270_v26 = vld [vmem:[%s1100_s15 + $0x8] sm:$0xff]   ;;  %s2068_s16 = sshll.u32 %s324_s9, 4  ;;  %s3428_s16 = int_to_ptr.vmem [resolvable:$true] %s2068_s16 }
 0x5bb   : > { %v2629_v52 = vunpack.i.l.bf16 %v2628_v43  ;;  %v1007_v53 = vsel %vm1003_vm8, %v1002_v49, %v2615_v41  ;;  %v1006_v54 = vsel %vm1003_vm8, %v1001_v35, %v2614_v42  ;;  %v1000_v55 = vsel %vm998_vm7, %v995_v44, %v2600_v34  ;;  %v2655_v49 = vld [vmem:[%s3106_s20 + $0x114] ss:$8 sps:$4 sm:$0xff]  }
 0x5bc   : > { %v1004_v57 = vsel %vm1003_vm8, %v999_v50, %v2619_v46  ;;  %v1005_v58 = vsel %vm1003_vm8, %v1000_v55, %v2620_v45  ;;  %v1012_v62 = vsel %vm1008_vm9, %v1007_v53, %v2625_v47  ;;  %v1011_v63 = vsel %vm1008_vm9, %v1006_v54, %v2624_v48  ;;  %v2652_v47 = vld [vmem:[%s3106_s20 + $0x104] ss:$8 sps:$4 sm:$0xff]   ;;  %v2650_v48 = vld [vmem:[%s3106_s20 + $0x100] ss:$8 sps:$4 sm:$0xff]   ;;  %v2653_v50 = vld [vmem:[%s3106_s20 + $0x110] ss:$8 sps:$4 sm:$0xff]  }
 0x5bd   : > { %v1009_v2 = vsel %vm1008_vm9, %v1004_v57, %v2629_v52  ;;  %v1010_v3 = vsel %vm1008_vm9, %v1005_v58, %v2630_v51  ;;  %v2658_v51 = vld [vmem:[%s3106_s20 + $0x124] ss:$8 sps:$4 sm:$0xff]   ;;  %v2656_v52 = vld [vmem:[%s3106_s20 + $0x120] ss:$8 sps:$4 sm:$0xff]   ;;  %v2661_v53 = vld [vmem:[%s3106_s20 + $0x134] ss:$8 sps:$4 sm:$0xff]  }
 0x5be   : > { %v2659_v54 = vld [vmem:[%s3106_s20 + $0x130] ss:$8 sps:$4 sm:$0xff]   ;;  %v2664_v55 = vld [vmem:[%s3106_s20 + $0x144] ss:$8 sps:$4 sm:$0xff]   ;;  %v2667_v57 = vld [vmem:[%s3106_s20 + $0x154] ss:$8 sps:$4 sm:$0xff]  }
 0x5bf   : > { %v2665_v58 = vld [vmem:[%s3106_s20 + $0x150] ss:$8 sps:$4 sm:$0xff]  }
 0x62b   : > { %v2638_v56 = vpop.permute.xlu1 %2637 }
 0x62c   : > { %v2640_v59 = vunpack.i.h.bf16 %v2638_v56  ;;  %v2639_v60 = vunpack.i.l.bf16 %v2638_v56  ;;  %v2633_v61 = vpop.permute.xlu0 %2632  ;;  %v2662_v56 = vld [vmem:[%s3106_s20 + $0x140] ss:$8 sps:$4 sm:$0xff]  }
 0x62d   : > { %v2635_v0 = vunpack.i.h.bf16 %v2633_v61  ;;  %v2634_v1 = vunpack.i.l.bf16 %v2633_v61  ;;  %v2673_v61 = vld [vmem:[%s3106_s20 + $0x174] ss:$8 sps:$4 sm:$0xff]  }
 0x62e   : > { %v1017_v6 = vsel %vm1013_vm10, %v1012_v62, %v2640_v59  ;;  %v1016_v7 = vsel %vm1013_vm10, %v1011_v63, %v2639_v60  ;;  %v2670_v59 = vld [vmem:[%s3106_s20 + $0x164] ss:$8 sps:$4 sm:$0xff]   ;;  %v2668_v60 = vld [vmem:[%s3106_s20 + $0x160] ss:$8 sps:$4 sm:$0xff]   ;;  %v2671_v62 = vld [vmem:[%s3106_s20 + $0x170] ss:$8 sps:$4 sm:$0xff]  }
 0x62f   : > { %v1014_v8 = vsel %vm1013_vm10, %v1009_v2, %v2634_v1  ;;  %v1015_v9 = vsel %vm1013_vm10, %v1010_v3, %v2635_v0  ;;  %v1019_v11 = vpack.c.bf16 %v1017_v6, %v1016_v7  ;;  %v2676_v63 = vld [vmem:[%s3106_s20 + $0x184] ss:$8 sps:$4 sm:$0xff]   ;;  %v2674_v0 = vld [vmem:[%s3106_s20 + $0x180] ss:$8 sps:$4 sm:$0xff]   ;;  %v2679_v1 = vld [vmem:[%s3106_s20 + $0x194] ss:$8 sps:$4 sm:$0xff]  }
 0x630   : > { %v1018_v10 = vpack.c.bf16 %v1015_v9, %v1014_v8  ;;  %v2677_v2 = vld [vmem:[%s3106_s20 + $0x190] ss:$8 sps:$4 sm:$0xff]   ;;  %v2682_v3 = vld [vmem:[%s3106_s20 + $0x1a4] ss:$8 sps:$4 sm:$0xff]   ;;  %v2680_v6 = vld [vmem:[%s3106_s20 + $0x1a0] ss:$8 sps:$4 sm:$0xff]  }
 0x631   : > { %v2685_v7 = vld [vmem:[%s3106_s20 + $0x1b4] ss:$8 sps:$4 sm:$0xff]   ;;  %v2683_v8 = vld [vmem:[%s3106_s20 + $0x1b0] ss:$8 sps:$4 sm:$0xff]   ;;  %v2688_v9 = vld [vmem:[%s3106_s20 + $0x1c4] ss:$8 sps:$4 sm:$0xff]  }
 0x632   : > { %2416 = vmatprep.mubr.msk.bf16.mxu0 %vm1034_vm11, %v1018_v10  ;;  %v2686_v10 = vld [vmem:[%s3106_s20 + $0x1c0] ss:$8 sps:$4 sm:$0xff]  }
 0x633   : > { %2417 = vmatmul.mubr.msk.bf16.vlgmr.msra.gmra.mrb[20].mxu0 %vm1034_vm11, %v1019_v11  ;;  %v2691_v11 = vld [vmem:[%s3106_s20 + $0x1d4] ss:$8 sps:$4 sm:$0xff]  }
 0x634   : > { %2432 = vmatprep.mubr.msk.bf16.mxu0 %vm365_vm0, %v2648_v12 }
 0x706   : > { %v2418_v20 = vpop.f32.mrb[20].mxu0 }
 0x707   : > { %v1079_v14 = vpop.f32.mrb[21].mxu0  ;;  %v1088_v16 = vadd.f32 %v2418_v20, %v2195_v13  ;;  %v2692_v20 = vld [vmem:[%s3106_s20 + $0x1e0] ss:$8 sps:$4 sm:$0xff]  }
 0x708   : > { %v1080_v19 = vadd.f32 %v2195_v13, %v1079_v14  ;;  %v2419_v5 = vpop.f32.mrb[22].mxu0  ;;  %v2697_v14 = vld [vmem:[%s3106_s20 + $0x1f4] ss:$8 sps:$4 sm:$0xff]  }
 0x709   : > { %v1091_v4 = vadd.f32 %v2419_v5, %v2195_v13  ;;  %v1082_v15 = vpop.f32.mrb[23].mxu0  ;;  %v1096_v23 = vmax.f32 %v1088_v16, 0.0  ;;  %v2748_v5 = vld [vmem:[%s3106_s20 + $0x204] ss:$8 sps:$4 sm:$0xff]  }
 0x70a   : > { %v1083_v17 = vadd.f32 %v2195_v13, %v1082_v15  ;;  %v1094_v18 = vmax.f32 %v1080_v19, 0.0  ;;  %v2694_v13 = vld [vmem:[%s3106_s20 + $0x1e4] ss:$8 sps:$4 sm:$0xff]   ;;  %v2695_v19 = vld [vmem:[%s3106_s20 + $0x1f0] ss:$8 sps:$4 sm:$0xff]  }
 0x70b   : > { %v1097_v21 = vmax.f32 %v1091_v4, 0.0 }
 0x70c   : > { %v1095_v22 = vmax.f32 %v1083_v17, 0.0 }
 0x70d   : > { %v3265_v25 = vpack.c.bf16 %v1097_v21, %v1096_v23 }
 0x70e   : > { %v3263_v24 = vpack.c.bf16 %v1095_v22, %v1094_v18 }
 0x710   : > { %2420 = vmatprep.subr.bf16.mxu1 %v3263_v24 }
 0x711   : > { %2421 = vmatpush3.bf16.msra.mxu1 %v3263_v24 }
 0x712   : > { %2422 = vmatprep.subr.bf16.mxu1 %v3265_v25 }
 0x715   : > { %2423 = vmatpush3.bf16.msra.mxu1 %v3265_v25 }
 0x718   : > { %2425 = vmatmul.mubr.msk.bf16.vlgmr.msra.gmra.mrb[12].mxu1 %vm365_vm0, %v3270_v26 }
 0x719   : > { %2440 = vmatprep.mubr.msk.bf16.mxu1 %vm365_vm0, %v2648_v12 }
 0x7eb   : > { %v2426_v27 = vpop.f32.mrb[12].mxu1 }
 0x7ec   : > { %v1157_v28 = vpop.f32.mrb[13].mxu1  ;;  %v3282_v34 = vmul.f32 0.5, %v2426_v27 }
 0x7ed   : > { %v2427_v29 = vpop.f32.mrb[14].mxu1  ;;  %v3276_v31 = vmul.f32 0.5, %v1157_v28 }
 0x7ee   : > { %v1160_v30 = vpop.f32.mrb[15].mxu1  ;;  %v3278_v32 = vmul.f32 0.5, %v2427_v29  ;;  %v2746_v29 = vld [vmem:[%s3106_s20 + $0x200] ss:$8 sps:$4 sm:$0xff]  }
 0x7ef   : > { %v3280_v33 = vmul.f32 0.5, %v1160_v30  ;;  %v2751_v30 = vld [vmem:[%s3106_s20 + $0x214] ss:$8 sps:$4 sm:$0xff]  }
 0x7f0   : > { %v3290_v37 = vpack.c.bf16 %v3278_v32, %v3282_v34 }
 0x7f1   : > { %v3286_v36 = vpack.c.bf16 %v3280_v33, %v3276_v31 }
 0x7f3   : > { %2428 = vmatprep.subr.bf16.mxu0 %v3286_v36 }
 0x7f4   : > { %2429 = vmatpush3.bf16.msra.mxu0 %v3286_v36 }
 0x7f5   : > { %2430 = vmatprep.subr.bf16.mxu0 %v3290_v37 }
 0x7f8   : > { %2431 = vmatpush3.bf16.msra.mxu0 %v3290_v37 }
 0x7fb   : > { %2433 = vmatmul.mubr.msk.bf16.vlgmr.msra.gmra.mrb[24].mxu0 %vm365_vm0, %v3270_v26 }
 0x7fc   : > { %2448 = vmatprep.mubr.msk.bf16.mxu0 %vm365_vm0, %v2648_v12  ;;  %v2689_v12 = vld [vmem:[%s3106_s20 + $0x1d0] ss:$8 sps:$4 sm:$0xff]  }
 0x8ce   : > { %v2434_v38 = vpop.f32.mrb[24].mxu0 }
 0x8cf   : > { %v1212_v39 = vpop.f32.mrb[25].mxu0  ;;  %v3305_v45 = vsub.f32 %v2434_v38, %v1096_v23  ;;  %v2703_v38 = vld [vmem:[%s3106_s20 + $0x14] ss:$8 sps:$4 sm:$0xff]  }
 0x8d0   : > { %v2435_v40 = vpop.f32.mrb[26].mxu0  ;;  %v3299_v42 = vsub.f32 %v1212_v39, %v1094_v18  ;;  %v2752_v39 = vld [vmem:[%s3106_s20 + $0x220] ss:$8 sps:$4 sm:$0xff]  }
 0x8d1   : > { %v1215_v41 = vpop.f32.mrb[27].mxu0  ;;  %v3301_v43 = vsub.f32 %v2435_v40, %v1097_v21  ;;  %v2757_v40 = vld [vmem:[%s3106_s20 + $0x234] ss:$8 sps:$4 sm:$0xff]  }
 0x8d2   : > { %v3303_v44 = vsub.f32 %v1215_v41, %v1095_v22  ;;  %v2701_v41 = vld [vmem:[%s3106_s20 + $0x10] ss:$8 sps:$4 sm:$0xff]  }
 0x8d3   : > { %v3313_v35 = vpack.c.bf16 %v3301_v43, %v3305_v45 }
 0x8d4   : > { %v3309_v46 = vpack.c.bf16 %v3303_v44, %v3299_v42 }
 0x8d6   : > { %2436 = vmatprep.subr.bf16.mxu1 %v3309_v46 }
 0x8d7   : > { %2437 = vmatpush3.bf16.msra.mxu1 %v3309_v46 }
 0x8d8   : > { %2438 = vmatprep.subr.bf16.mxu1 %v3313_v35 }
 0x8db   : > { %2439 = vmatpush3.bf16.msra.mxu1 %v3313_v35 }
 0x8dc   : > { %1888 = vmatprep.subr.bf16.mxu1 %v2652_v47  ;;  %v2755_v47 = vld [vmem:[%s3106_s20 + $0x230] ss:$8 sps:$4 sm:$0xff]  }
 0x8de   : > { %2441 = vmatmul.mubr.msk.bf16.vlgmr.msra.gmra.mrb[16].mxu1 %vm365_vm0, %v3270_v26 }
 0x8df   : > { %1889 = vmatpush1.bf16.msra.mxu1 %v2650_v48  ;;  %v2704_v48 = vld [vmem:[%s3106_s20 + $0x20] ss:$8 sps:$4 sm:$0xff]  }
 0x8e0   : > { %1890 = vmatprep.subr.bf16.mxu1 %v2655_v49  ;;  %v2709_v49 = vld [vmem:[%s3106_s20 + $0x34] ss:$8 sps:$4 sm:$0xff]  }
 0x8e3   : > { %1891 = vmatpush1.bf16.msra.mxu1 %v2653_v50  ;;  %v2707_v50 = vld [vmem:[%s3106_s20 + $0x30] ss:$8 sps:$4 sm:$0xff]  }
 0x8e4   : > { %1892 = vmatprep.subr.bf16.mxu1 %v2658_v51  ;;  %v2712_v51 = vld [vmem:[%s3106_s20 + $0x44] ss:$8 sps:$4 sm:$0xff]  }
 0x8e7   : > { %1893 = vmatpush1.bf16.msra.mxu1 %v2656_v52  ;;  %v2761_v52 = vld [vmem:[%s3106_s20 + $0x250] ss:$8 sps:$4 sm:$0xff]  }
 0x8e8   : > { %1894 = vmatprep.subr.bf16.mxu1 %v2661_v53  ;;  %v2710_v53 = vld [vmem:[%s3106_s20 + $0x40] ss:$8 sps:$4 sm:$0xff]  }
 0x8eb   : > { %1895 = vmatpush1.bf16.msra.mxu1 %v2659_v54  ;;  %v2715_v54 = vld [vmem:[%s3106_s20 + $0x54] ss:$8 sps:$4 sm:$0xff]  }
 0x8ec   : > { %1896 = vmatprep.subr.bf16.mxu1 %v2664_v55  ;;  %v2713_v55 = vld [vmem:[%s3106_s20 + $0x50] ss:$8 sps:$4 sm:$0xff]  }
 0x8ef   : > { %1897 = vmatpush1.bf16.msra.mxu1 %v2662_v56  ;;  %v2718_v56 = vld [vmem:[%s3106_s20 + $0x64] ss:$8 sps:$4 sm:$0xff]  }
 0x8f0   : > { %1898 = vmatprep.subr.bf16.mxu1 %v2667_v57  ;;  %v2716_v57 = vld [vmem:[%s3106_s20 + $0x60] ss:$8 sps:$4 sm:$0xff]  }
 0x8f3   : > { %1899 = vmatpush1.bf16.msra.mxu1 %v2665_v58  ;;  %v2721_v58 = vld [vmem:[%s3106_s20 + $0x74] ss:$8 sps:$4 sm:$0xff]  }
 0x8f4   : > { %1900 = vmatprep.subr.bf16.mxu1 %v2670_v59  ;;  %v2719_v59 = vld [vmem:[%s3106_s20 + $0x70] ss:$8 sps:$4 sm:$0xff]  }
 0x8f7   : > { %1901 = vmatpush1.bf16.msra.mxu1 %v2668_v60  ;;  %v2724_v60 = vld [vmem:[%s3106_s20 + $0x84] ss:$8 sps:$4 sm:$0xff]  }
 0x8f8   : > { %1902 = vmatprep.subr.bf16.mxu1 %v2673_v61  ;;  %v2722_v61 = vld [vmem:[%s3106_s20 + $0x80] ss:$8 sps:$4 sm:$0xff]  }
 0x8fb   : > { %1903 = vmatpush1.bf16.msra.mxu1 %v2671_v62  ;;  %v2727_v62 = vld [vmem:[%s3106_s20 + $0x94] ss:$8 sps:$4 sm:$0xff]  }
 0x8fc   : > { %1904 = vmatprep.subr.bf16.mxu1 %v2676_v63  ;;  %v2725_v63 = vld [vmem:[%s3106_s20 + $0x90] ss:$8 sps:$4 sm:$0xff]  }
 0x8ff   : > { %1905 = vmatpush1.bf16.msra.mxu1 %v2674_v0  ;;  %v2730_v0 = vld [vmem:[%s3106_s20 + $0xa4] ss:$8 sps:$4 sm:$0xff]  }
 0x900   : > { %1906 = vmatprep.subr.bf16.mxu1 %v2679_v1  ;;  %v2728_v1 = vld [vmem:[%s3106_s20 + $0xa0] ss:$8 sps:$4 sm:$0xff]  }
 0x903   : > { %1907 = vmatpush1.bf16.msra.mxu1 %v2677_v2  ;;  %v2733_v2 = vld [vmem:[%s3106_s20 + $0xb4] ss:$8 sps:$4 sm:$0xff]  }
 0x904   : > { %1908 = vmatprep.subr.bf16.mxu1 %v2682_v3  ;;  %v2731_v3 = vld [vmem:[%s3106_s20 + $0xb0] ss:$8 sps:$4 sm:$0xff]  }
 0x907   : > { %1909 = vmatpush1.bf16.msra.mxu1 %v2680_v6  ;;  %v2736_v6 = vld [vmem:[%s3106_s20 + $0xc4] ss:$8 sps:$4 sm:$0xff]  }
 0x908   : > { %1910 = vmatprep.subr.bf16.mxu1 %v2685_v7  ;;  %v2734_v7 = vld [vmem:[%s3106_s20 + $0xc0] ss:$8 sps:$4 sm:$0xff]  }
 0x90b   : > { %1911 = vmatpush1.bf16.msra.mxu1 %v2683_v8  ;;  %v2739_v8 = vld [vmem:[%s3106_s20 + $0xd4] ss:$8 sps:$4 sm:$0xff]  }
 0x90c   : > { %1912 = vmatprep.subr.bf16.mxu1 %v2688_v9  ;;  %v2737_v9 = vld [vmem:[%s3106_s20 + $0xd0] ss:$8 sps:$4 sm:$0xff]  }
 0x90f   : > { %1913 = vmatpush1.bf16.msra.mxu1 %v2686_v10  ;;  %v2742_v10 = vld [vmem:[%s3106_s20 + $0xe4] ss:$8 sps:$4 sm:$0xff]  }
 0x910   : > { %1914 = vmatprep.subr.bf16.mxu1 %v2691_v11  ;;  %v2740_v11 = vld [vmem:[%s3106_s20 + $0xe0] ss:$8 sps:$4 sm:$0xff]  }
 0x913   : > { %1915 = vmatpush1.bf16.msra.mxu1 %v2689_v12  ;;  %v2745_v12 = vld [vmem:[%s3106_s20 + $0xf4] ss:$8 sps:$4 sm:$0xff]  }
 0x914   : > { %1916 = vmatprep.subr.bf16.mxu1 %v2694_v13  ;;  %v2743_v13 = vld [vmem:[%s3106_s20 + $0xf0] ss:$8 sps:$4 sm:$0xff]  }
 0x917   : > { %1917 = vmatpush1.bf16.msra.mxu1 %v2692_v20  ;;  %v2766_v20 = vld [vmem:[%s3106_s20 + $0x264] ss:$8 sps:$4 sm:$0xff]  }
 0x918   : > { %1918 = vmatprep.subr.bf16.mxu1 %v2697_v14  ;;  %v2764_v14 = vld [vmem:[%s3106_s20 + $0x260] ss:$8 sps:$4 sm:$0xff]  }
 0x91b   : > { %1919 = vmatpush1.bf16.msra.mxu1 %v2695_v19  ;;  %v2769_v19 = vld [vmem:[%s3106_s20 + $0x274] ss:$8 sps:$4 sm:$0xff]  }
 0x91c   : > { %1941 = vmatprep.subr.bf16.mxu1 %v2748_v5  ;;  %v2767_v5 = vld [vmem:[%s3106_s20 + $0x270] ss:$8 sps:$4 sm:$0xff]  }
 0x9b1   : > { %v2442_v4 = vpop.f32.mrb[16].mxu1 }
 0x9b2   : > { %v1267_v15 = vpop.f32.mrb[17].mxu1  ;;  %v1284_v17 = vsub.f32 %v2442_v4, %v3282_v34  ;;  %v2698_v34 = vld [vmem:[%s3106_s20] ss:$8 sps:$4 sm:$0xff]   ;;  %v2917_v4 = vmov 0  }
 0x9b3   : > { %v2443_v16 = vpop.f32.mrb[18].mxu1  ;;  %v1282_v22 = vsub.f32 %v1267_v15, %v3276_v31  ;;  %v2749_v31 = vld [vmem:[%s3106_s20 + $0x210] ss:$8 sps:$4 sm:$0xff]  }
 0x9b4   : > { %v1285_v18 = vsub.f32 %v2443_v16, %v3278_v32  ;;  %v1270_v21 = vpop.f32.mrb[19].mxu1  ;;  %v2700_v32 = vld [vmem:[%s3106_s20 + $0x4] ss:$8 sps:$4 sm:$0xff]  }
 0x9b5   : > { %v1283_v23 = vsub.f32 %v1270_v21, %v3280_v33  ;;  %v2754_v33 = vld [vmem:[%s3106_s20 + $0x224] ss:$8 sps:$4 sm:$0xff]  }
 0x9b6   : > { %v1287_v27 = vpack.c.bf16 %v1285_v18, %v1284_v17 }
 0x9b7   : > { %v1286_v28 = vpack.c.bf16 %v1283_v23, %v1282_v22 }
 0x9b9   : > { %2444 = vmatprep.subr.bf16.mxu0 %v1286_v28  ;;  %1920 = vmatprep.mubr.bf16.mxu1 %v1286_v28 }
 0x9ba   : > { %2445 = vmatpush3.bf16.msra.mxu0 %v1286_v28  ;;  %1921 = vmatmul.mubr.bf16.vlgmr.msra.gmra.mrb[20].mxu1 %v3309_v46  ;;  %v2706_v46 = vld [vmem:[%s3106_s20 + $0x24] ss:$8 sps:$4 sm:$0xff]  }
 0x9bb   : > { %2446 = vmatprep.subr.bf16.mxu0 %v1287_v27  ;;  %1930 = vmatprep.mubr.bf16.mxu1 %v1287_v27 }
 0x9bc   : > { %1942 = vmatpush1.bf16.msra.mxu1 %v2746_v29 }
 0x9bd   : > { %1943 = vmatprep.subr.bf16.mxu1 %v2751_v30 }
 0x9be   : > { %2447 = vmatpush3.bf16.msra.mxu0 %v1287_v27 }
 0x9bf   : > { %1835 = vmatprep.subr.bf16.mxu0 %v2700_v32 }
 0x9c0   : > { %1944 = vmatpush1.bf16.msra.mxu1 %v2749_v31 }
 0x9c1   : > { %2449 = vmatmul.mubr.msk.bf16.vlgmr.msra.gmra.mrb[28].mxu0 %vm365_vm0, %v3270_v26  ;;  %1945 = vmatprep.subr.bf16.mxu1 %v2754_v33  ;;  %v2760_v26 = vld [vmem:[%s3106_s20 + $0x244] ss:$8 sps:$4 sm:$0xff]   ;;  %v1425_v33 = vlaneseq }
 0x9c2   : > { %1836 = vmatpush1.bf16.msra.mxu0 %v2698_v34  ;;  %1867 = vmatprep.mubr.bf16.mxu0 %v3286_v36  ;;  %v2758_v36 = vld [vmem:[%s3106_s20 + $0x240] ss:$8 sps:$4 sm:$0xff]  }
 0x9c3   : > { %1931 = vmatmul.mubr.bf16.gmra.mrb[24].mxu1 %v3313_v35  ;;  %1837 = vmatprep.subr.bf16.mxu0 %v2703_v38  ;;  %v2763_v35 = vld [vmem:[%s3106_s20 + $0x254] ss:$8 sps:$4 sm:$0xff]   ;;  %s326_s20 = scalar_select %p325_p4, %s2980_s28, 1 }
 0x9c4   : > { %1946 = vmatpush1.bf16.msra.mxu1 %v2752_v39  ;;  %1973 = vmatprep.mubr.bf16.mxu1 %v2917_v4  ;;  %s2918_s28 = smov [#allocation7]  }
 0x9c5   : > { %1947 = vmatprep.subr.bf16.mxu1 %v2757_v40  ;;  %s2172_s22 = sshll.u32 %s326_s20, 1  ;;  %s2054_s20 = scalar_lea.sflag [#allocation4], %s3102_s21 }
 0x9c6   : > { %1838 = vmatpush1.bf16.msra.mxu0 %v2701_v41  ;;  %s328_s10 = scalar_lea.vmem %s3480_s5, %s2172_s22  ;;  %s2830_s22 = scalar_lea.vmem %s3428_s16, 256 }
 0x9c7   : > { %1839 = vmatprep.subr.bf16.mxu0 %v2706_v46  ;;  %v1423_v34 = vld [vmem:[%s328_s10] sm:$0x3]  ;;  %p2831_p6 = scmp.ne.s32.totalorder %s3428_s16, %s2830_s22  ;;  %s2834_s14 = sshll.u32 %s2918_s28, 4  ;;  %s2835_s14 = int_to_ptr.vmem [resolvable:$false] %s2834_s14 }
 0x9c8   : > { %1948 = vmatpush1.bf16.msra.mxu1 %v2755_v47  ;;  %s2836_s0 = scalar_lea.vmem %s2835_s14, 512  ;;  %p2837_p13 = scmp.lt.s32.totalorder %s3428_s16, %s2835_s14 }
 0x9c9   : > { %1949 = vmatprep.subr.bf16.mxu1 %v2760_v26  ;;  %p2832_p8 = pnand %p2831_p6, %p3050_p12  ;;  %p2838_p3 = scmp.lt.s32.totalorder %s2836_s0, %s2830_s22 }
 0x9ca   : > { %1840 = vmatpush1.bf16.msra.mxu0 %v2704_v48 }
 0x9cb   : > { %1841 = vmatprep.subr.bf16.mxu0 %v2709_v49  ;;  %p2833_p10 = pneg %p2832_p8  ;;  %p2839_p7 = por %p2838_p3, %p2837_p13 }
 0x9cc   : > { %1950 = vmatpush1.bf16.msra.mxu1 %v2758_v36 }
 0x9cd   : > { %1951 = vmatprep.subr.bf16.mxu1 %v2763_v35  ;;  %p2840_p9 = pnand %p2839_p7, %p2833_p10 }
 0x9ce   : > { %1842 = vmatpush1.bf16.msra.mxu0 %v2707_v50 }
 0x9cf   : > { %1843 = vmatprep.subr.bf16.mxu0 %v2712_v51 }
 0x9d0   : > { %1952 = vmatpush1.bf16.msra.mxu1 %v2761_v52 }
 0x9d1   : > { %1953 = vmatprep.subr.bf16.mxu1 %v2766_v20 }
 0x9d2   : > { %1844 = vmatpush1.bf16.msra.mxu0 %v2710_v53 }
 0x9d3   : > { %1845 = vmatprep.subr.bf16.mxu0 %v2715_v54 }
 0x9d4   : > { %1954 = vmatpush1.bf16.msra.mxu1 %v2764_v14 }
 0x9d5   : > { %1955 = vmatprep.subr.bf16.mxu1 %v2769_v19  ;;  %v2006_v19 = vld [vmem:[%s3481_s6] sm:$0xf] }
 0x9d6   : > { %1846 = vmatpush1.bf16.msra.mxu0 %v2713_v55 }
 0x9d7   : > { %1847 = vmatprep.subr.bf16.mxu0 %v2718_v56 }
 0x9d8   : > { %1956 = vmatpush1.bf16.msra.mxu1 %v2767_v5 }
 0x9da   : > { %1848 = vmatpush1.bf16.msra.mxu0 %v2716_v57 }
 0x9db   : > { %1849 = vmatprep.subr.bf16.mxu0 %v2721_v58 }
 0x9de   : > { %1850 = vmatpush1.bf16.msra.mxu0 %v2719_v59 }
 0x9df   : > { %1851 = vmatprep.subr.bf16.mxu0 %v2724_v60 }
 0x9e2   : > { %1852 = vmatpush1.bf16.msra.mxu0 %v2722_v61 }
 0x9e3   : > { %1853 = vmatprep.subr.bf16.mxu0 %v2727_v62 }
 0x9e6   : > { %1854 = vmatpush1.bf16.msra.mxu0 %v2725_v63 }
 0x9e7   : > { %1855 = vmatprep.subr.bf16.mxu0 %v2730_v0 }
 0x9ea   : > { %1856 = vmatpush1.bf16.msra.mxu0 %v2728_v1 }
 0x9eb   : > { %1857 = vmatprep.subr.bf16.mxu0 %v2733_v2 }
 0x9ee   : > { %1858 = vmatpush1.bf16.msra.mxu0 %v2731_v3 }
 0x9ef   : > { %1859 = vmatprep.subr.bf16.mxu0 %v2736_v6 }
 0x9f2   : > { %1860 = vmatpush1.bf16.msra.mxu0 %v2734_v7 }
 0x9f3   : > { %1861 = vmatprep.subr.bf16.mxu0 %v2739_v8 }
 0x9f6   : > { %1862 = vmatpush1.bf16.msra.mxu0 %v2737_v9 }
 0x9f7   : > { %1863 = vmatprep.subr.bf16.mxu0 %v2742_v10 }
 0x9fa   : > { %1864 = vmatpush1.bf16.msra.mxu0 %v2740_v11 }
 0x9fb   : > { %1865 = vmatprep.subr.bf16.mxu0 %v2745_v12 }
 0x9fe   : > { %1866 = vmatpush1.bf16.msra.mxu0 %v2743_v13 }
 0xa01   : > { %1868 = vmatmul.mubr.bf16.vlgmr.msra.gmra.mrb[32].mxu0 %v3263_v24 }
 0xa02   : > { %1877 = vmatprep.mubr.bf16.mxu0 %v3290_v37 }
 0xa09   : > { %1878 = vmatmul.mubr.bf16.gmra.mrb[36].mxu0 %v3265_v25 }
 0xa0a   : > { %2042 = vmatprep.mubr.bf16.mxu0 %v2917_v4 }
 0xa94   : > { %v2450_v15 = vpop.f32.mrb[28].mxu0 }
 0xa95   : > { %v1322_v16 = vpop.f32.mrb[29].mxu0  ;;  %v1339_v24 = vsub.f32 %v2450_v15, %v3305_v45 }
 0xa96   : > { %v2451_v17 = vpop.f32.mrb[30].mxu0  ;;  %v1337_v25 = vsub.f32 %v1322_v16, %v3299_v42  ;;  %v1426_v42 = vshrl.u32 %v1425_v33, 7 }
 0xa97   : > { %v1340_v37 = vsub.f32 %v2451_v17, %v3301_v43  ;;  %v1325_v18 = vpop.f32.mrb[31].mxu0 }
 0xa98   : > { %v1338_v21 = vsub.f32 %v1325_v18, %v3303_v44  ;;  %v1427_v44 = vsub.s32 0, %v1426_v42  ;;  %v1431_v38 = vsub.s32 1, %v1426_v42 }
 0xa99   : > { %v1342_v22 = vpack.c.bf16 %v1340_v37, %v1339_v24 }
 0xa9a   : > { %v1341_v23 = vpack.c.bf16 %v1338_v21, %v1337_v25  ;;  %v1428_v39 = vrot.slane %v1423_v34, %v1427_v44  ;;  %v1432_v40 = vrot.slane %v1423_v34, %v1431_v38 }
 0xa9c   : > { %1974 = vmatmul.mubr.bf16.vlgmr.msra.gmra.mrb[20].mxu1 %v1341_v23 }
 0xa9d   : > { %1983 = vmatprep.mubr.bf16.mxu1 %v2917_v4 }
 0xaa4   : > { %1984 = vmatmul.mubr.bf16.gmra.mrb[24].mxu1 %v1342_v22 }
 0xad4   : > { %v1869_v27 = vpop.f32.mrb[32].mxu0 }
 0xad5   : > { %v1871_v28 = vpop.f32.mrb[33].mxu0  ;;  %v1870_v41 = vadd.f32 %v1869_v27, %v1428_v39 }
 0xad6   : > { %v1873_v29 = vpop.f32.mrb[34].mxu0  ;;  %v1872_v46 = vadd.f32 %v1871_v28, %v1432_v40 }
 0xad7   : > { %v1875_v30 = vpop.f32.mrb[35].mxu0  ;;  %v1874_v26 = vadd.f32 %v1873_v29, %v1428_v39 }
 0xad8   : > { %v1876_v36 = vadd.f32 %v1875_v30, %v1432_v40 }
 0xadc   : > { %v1879_v32 = vpop.f32.mrb[36].mxu0 }
 0xadd   : > { %v1881_v45 = vpop.f32.mrb[37].mxu0  ;;  %v1880_v58 = vadd.f32 %v1879_v32, %v1428_v39 }
 0xade   : > { %v1883_v31 = vpop.f32.mrb[38].mxu0  ;;  %v1882_v60 = vadd.f32 %v1881_v45, %v1432_v40 }
 0xadf   : > { %v1885_v43 = vpop.f32.mrb[39].mxu0  ;;  %v1884_v63 = vadd.f32 %v1883_v31, %v1428_v39 }
 0xae0   : > { %v1886_v2 = vadd.f32 %v1885_v43, %v1432_v40 }
 0xb6f   : > { %v1975_v47 = vpop.f32.mrb[20].mxu1 }
 0xb70   : > { %v2453_v48 = vadd.f32 %v1975_v47, %v1870_v41  ;;  %v1977_v49 = vpop.f32.mrb[21].mxu1 }
 0xb71   : > { %v2455_v35 = vadd.f32 %v1977_v49, %v1872_v46  ;;  %v1979_v50 = vpop.f32.mrb[22].mxu1 }
 0xb72   : > { %v2457_v51 = vadd.f32 %v1979_v50, %v1874_v26  ;;  %v1981_v52 = vpop.f32.mrb[23].mxu1  ;;  %v1994_v54 = vmax.f32 %v2453_v48, 0.0 }
 0xb73   : > { %v2459_v53 = vadd.f32 %v1981_v52, %v1876_v36  ;;  %v1995_v56 = vmax.f32 %v2455_v35, 0.0 }
 0xb74   : > { %v1996_v55 = vmax.f32 %v2457_v51, 0.0 }
 0xb75   : > { %v1997_v57 = vmax.f32 %v2459_v53, 0.0 }
 0xb76   : > { %v2002_v59 = vpack.c.bf16 %v1996_v55, %v1994_v54 }
 0xb77   : > { %v2003_v61 = vpack.c.bf16 %v1997_v57, %v1995_v56  ;;  %v1985_v62 = vpop.f32.mrb[24].mxu1 }
 0xb78   : > { %v2461_v0 = vadd.f32 %v1985_v62, %v1880_v58  ;;  %v1987_v1 = vpop.f32.mrb[25].mxu1 }
 0xb79   : > { %v2463_v3 = vadd.f32 %v1987_v1, %v1882_v60  ;;  %v1989_v6 = vpop.f32.mrb[26].mxu1  ;;  %2010 = vmatprep.subr.bf16.mxu0 %v2003_v61 }
 0xb7a   : > { %v2465_v7 = vadd.f32 %v1989_v6, %v1884_v63  ;;  %v1991_v8 = vpop.f32.mrb[27].mxu1  ;;  %2011 = vmatpush1.bf16.msra.mxu0 %v2002_v59  ;;  %v1998_v10 = vmax.f32 %v2461_v0, 0.0 }
 0xb7b   : > { %v2467_v9 = vadd.f32 %v1991_v8, %v1886_v2  ;;  %v1999_v12 = vmax.f32 %v2463_v3, 0.0 }
 0xb7c   : > { %v2000_v11 = vmax.f32 %v2465_v7, 0.0 }
 0xb7d   : > { %v2001_v13 = vmax.f32 %v2467_v9, 0.0 }
 0xb7e   : > { %v2004_v20 = vpack.c.bf16 %v2000_v11, %v1998_v10 }
 0xb7f   : > { %v2005_v14 = vpack.c.bf16 %v2001_v13, %v1999_v12 }
 0xb81   : > { %2012 = vmatprep.subr.bf16.mxu0 %v2005_v14 }
 0xb82   : > { %2013 = vmatpush1.bf16.msra.mxu0 %v2004_v20 }
 0xb85   : > { %2291 = vmatmul.mubr.msk.bf16.vlgmr.msra.gmra.mrb[40].mxu0 %vm365_vm0, %v2006_v19 }
 0xc58   : > { %v2044_v5 = vpop.f32.mrb[40].mxu0 }
 0xc59   : > { %2051 = vst [vmem:[%s324_s9] sm:$0xff] %v2044_v5  ;;  %v2046_v4 = vpop.f32.mrb[41].mxu0 }
 0xc5a   : > { %2052 = vst [vmem:[%s324_s9 + $0x8] sm:$0xff] %v2046_v4  ;;  %v2048_v15 = vpop.f32.mrb[42].mxu0 }
 0xc5b   : > { %v2049_v16 = vpop.f32.mrb[43].mxu0 }
 0xc5c   : > { %2843 = shalt.err (!%p2840_p9)
}
 0xc5d   : > { %s2844_s21 = scalar_lea.hbm %s3433_s29, 256  ;;  %s2848_s12 = scalar_lea.hbm %s3482_s7, 512 }
 0xc5e   : > { %p2845_p2 = scmp.ne.s32.totalorder %s3433_s29, %s2844_s21  ;;  %p2849_p1 = scmp.lt.u32.totalorder %s3433_s29, %s3482_s7 }
 0xc5f   : > { %p2850_p11 = scmp.lt.u32.totalorder %s2848_s12, %s2844_s21  ;;  %p2852_p6 = scmp.lt.u32.totalorder %s2844_s21, %s3433_s29 }
 0xc60   : > { %p2846_p0 = pnand %p2845_p2, %p3050_p12 }
 0xc61   : > { %p2851_p4 = por %p2850_p11, %p2849_p1 }
 0xc62   : > { %p2847_p5 = pneg %p2846_p0 }
 0xc63   : > { %p2853_p8 = por %p2852_p6, %p2851_p4 }
 0xc65   : > { %p2854_p10 = pnand %p2853_p8, %p2847_p5 }
 0xc67   : > { %2857 = shalt.err (!%p2854_p10)
}
 0xc68   : > { %2486 = dma.vmem_to_hbm [thread:$0]  (%p3050_p12), %s3428_s16, 256, %s3433_s29, %s2054_s20  }
 0xc69 PF: > { %s2080_s11 = sand.u32 1, %s2888_s24   ;;  %p3499_p13 = scmp.ne.s32.totalorder %s3488_s8, 0 }
 0xc6a   : > { %p3500_p3 = scmp.ge.s32.totalorder %s2900_s27, 2  ;;  %s2081_s15 = scalar_lea.sflag [#allocation4], %s2080_s11 }
 0xc6c   : > { %p2497_p7 = pnand %p3500_p3, %p3499_p13 }
 0xc6e   : > { %2883 = dma.done.wait (!%p2497_p7), %s2081_s15, 256  }
 0xc6f   : > { %2885 = vsyncadd (!%p2497_p7), %s2081_s15, 4294967040  ;;  %p21_p9 = scmp.ge.s32.totalorder %s3015_s13, 4   ;;  %s3501_s24 = smov %s2892_s25 }
 0xc70   : > { %s3502_s25 = smov %s2896_s26  ;;  %s3503_s26 = smov %s3046_s18 }
 0xc71   : > { %s3504_s27 = smov %s3015_s13  ;;  %23 = sbr.rel (!%p21_p9) target bundleno = 8 (0x8), region = 103 }
 0xc78   :  { %2086 = vsyncpa [#allocation3], 1 }
 0xc79   :  { %2088 = vsyncpa [#allocation3 + $0x1], 1 }
 0xc7a   :  { %2089 = vsyncpa [#allocation6], 1 }
 0xc7b   :  { %2091 = vsyncpa [#allocation6 + $0x1], 1 }
 0xc7c   :  { %2092 = vsyncpa [#allocation4], 1 }
 0xc7d   :  { %2094 = vsyncpa [#allocation4 + $0x1], 1 }

</bundles_post_ra>
